<compile_context>
chip_gen: v7x
topology: tpu7x:2x2x1
jax: 0.10.0
libtpu: 0.0.40
codegen_flags: <defaults>
</compile_context>

<pallas_src>
import functools

import jax
import jax.numpy as jnp
from jax import lax
from jax.experimental import pallas as pl
from jax.experimental.pallas import tpu as pltpu

NEG_SLOPE = 0.2  # negative_slope of the LeakyReLU in GATConv


def _gat_fused_kernel(*refs, layer_cfgs, use_l2norm, hidden_pad, logits_pad):
    """Fused multi-layer GATConv forward.

    refs = (h0, bias, [w_aug, a_src] * n_layers, h_out, logits)
      h0:     (N, num_hidden)              bf16  input node features
      bias:   (N, N)                       bf16  additive mask: 0 on edges, -1e9 off
      w_aug:  (in_dim, heads*out_dim + heads) bf16  [W | W @ A_r]  (z and er fused)
      a_src:  (heads, heads*out_dim)       bf16  block rows of attn_l (el = a_src . z^T)
      h_out:  (N, hidden_pad)              f32 output (padded, lane-dense)
      logits: (N, logits_pad)              f32 output (padded, lane-dense)
    """
    n_layers = len(layer_cfgs)
    h_ref, bias_ref = refs[0], refs[1]
    p_refs = refs[2:2 + 2 * n_layers]
    h_out_ref = refs[2 + 2 * n_layers]
    logits_ref = refs[3 + 2 * n_layers]

    h = h_ref[...]                          # (N, in_dim) bf16
    n = h.shape[0]

    logits = None
    for li, (heads, out_dim, apply_act) in enumerate(layer_cfgs):
        w_aug = p_refs[2 * li][...]                   # bf16 (in, H*D + H)
        a_src = p_refs[2 * li + 1][...]               # bf16 (H, H*D)
        is_output_layer = li == n_layers - 1
        width = heads * out_dim

        # Single projection matmul produces z AND all destination scores er.
        z_full = jnp.dot(h, w_aug, preferred_element_type=jnp.float32)  # (N, H*D+H)
        z = z_full[:, :width]                          # (N, H*D) f32
        er_all = z_full[:, width:width + heads]        # (N, H)   f32
        z_bf = z.astype(jnp.bfloat16)

        # Source scores in row orientation (bf16 operands, f32 accumulate).
        #   el_all[hd, j] = <z_j(head hd), attn_l[hd]>
        el_all = lax.dot_general(a_src, z_bf, (((1,), (1,)), ((), ())),
                                 preferred_element_type=jnp.float32)    # (H, N)

        head_outs = []
        for hd in range(heads):  # heads is small & static -> unrolled
            er_col = er_all[:, hd:hd + 1]              # (N, 1)
            el_row = el_all[hd:hd + 1, :]              # (1, N)
            e = er_col + el_row                        # (N, N) e[i,j], edge j -> i
            e = jnp.where(e > 0, e, NEG_SLOPE * e)     # LeakyReLU
            # Additive edge mask: re-read the VMEM-resident ref here instead of
            # keeping an O(N^2) f32 value live across layers/heads.
            e = e + bias_ref[...].astype(jnp.float32)
            m = jnp.max(e, axis=1, keepdims=True)
            p = jnp.exp(e - m)                         # unnormalized attention (f32)
            denom = jnp.sum(p, axis=1, keepdims=True)
            inv = pl.reciprocal(denom, approx=True)    # EUP slot -> ~free

            zh = z_bf[:, hd * out_dim:(hd + 1) * out_dim]           # (N, D) bf16
            rst = jnp.dot(p.astype(jnp.bfloat16), zh,
                          preferred_element_type=jnp.float32)       # (N, D) f32
            rst = rst * inv                            # normalize on (N,D), not (N,N)
            if apply_act:                              # ELU
                rst = jnp.where(rst > 0, rst,
                                jnp.exp(jnp.minimum(rst, 0.0)) - 1.0)
            head_outs.append(rst)

        if not is_output_layer:
            # flatten(1): heads side-by-side, kept as a value (no scratch).
            h_full = head_outs[0] if heads == 1 else jnp.concatenate(head_outs, axis=1)
            if li == n_layers - 2:                     # last hidden layer -> output 0
                pad = hidden_pad - width
                h_pad = h_full if pad == 0 else jnp.concatenate(
                    [h_full, jnp.zeros((n, pad), jnp.float32)], axis=1)
                h_out_ref[...] = h_pad.astype(h_out_ref.dtype)      # lane-dense store
            h = h_full.astype(jnp.bfloat16)
        else:
            # mean over heads (no concat needed)
            acc = head_outs[0]
            for ho in head_outs[1:]:
                acc = acc + ho
            logits = acc * jnp.float32(1.0 / heads)

    if use_l2norm:
        norm = jnp.sqrt(jnp.sum(logits * logits, axis=1, keepdims=True))
        logits = logits / jnp.maximum(norm, jnp.float32(1e-12))
    pad = logits_pad - logits.shape[1]
    if pad > 0:
        logits = jnp.concatenate([logits, jnp.zeros((n, pad), jnp.float32)], axis=1)
    logits_ref[...] = logits.astype(logits_ref.dtype)               # lane-dense store


def _block_attn(attn_vec):
    """(heads, out_dim) -> block-'diagonal' (heads*out_dim, heads) matrix."""
    heads, out_dim = attn_vec.shape
    m = jnp.zeros((heads * out_dim, heads), jnp.float32)
    for hd in range(heads):
        m = m.at[hd * out_dim:(hd + 1) * out_dim, hd].set(attn_vec[hd])
    return m


def _round_up(x, m):
    return ((x + m - 1) // m) * m


def gat_forward(h0, params, adj, *, num_layers, heads, num_hidden, num_classes,
                use_l2norm=True):
    """Mirrors GAT.forward: returns (h, logits) from one fused Pallas kernel."""
    n = h0.shape[0]

    layer_cfgs = []
    inputs = [
        h0.astype(jnp.bfloat16),
        # bf16 additive mask halves the only O(N^2) input.
        jnp.where(adj > 0, jnp.float32(0.0), jnp.float32(-1e9)).astype(jnp.bfloat16),
    ]
    for li, (w, al, ar) in enumerate(params):
        hd = heads[li] if li < num_layers else heads[-1]
        out_dim = num_hidden if li < num_layers else num_classes
        apply_act = li < num_layers
        layer_cfgs.append((hd, out_dim, apply_act))
        a_dst = _block_attn(ar)                      # (H*D, H)  for er
        a_src = _block_attn(al).T                    # (H, H*D)  for el
        w_aug = jnp.concatenate([w, w @ a_dst], axis=1)   # fold er into projection
        inputs.append(w_aug.astype(jnp.bfloat16))
        inputs.append(a_src.astype(jnp.bfloat16))

    hidden_width = heads[num_layers - 1] * num_hidden
    hidden_pad = _round_up(hidden_width, 128)
    logits_pad = _round_up(num_classes, 128)

    kernel = functools.partial(_gat_fused_kernel,
                               layer_cfgs=tuple(layer_cfgs),
                               use_l2norm=use_l2norm,
                               hidden_pad=hidden_pad,
                               logits_pad=logits_pad)
    vmem = pl.BlockSpec(memory_space=pltpu.MemorySpace.VMEM)
    h_out_pad, logits_pad_arr = pl.pallas_call(
        kernel,
        out_shape=(jax.ShapeDtypeStruct((n, hidden_pad), jnp.float32),
                   jax.ShapeDtypeStruct((n, logits_pad), jnp.float32)),
        in_specs=[vmem] * len(inputs),
        out_specs=(vmem, vmem),
        compiler_params=pltpu.CompilerParams(vmem_limit_bytes=64 * 1024 * 1024),
    )(*inputs)
    # Slice the lane-dense padded outputs back to their true widths.
    return h_out_pad[:, :hidden_width], logits_pad_arr[:, :num_classes]


def init_gat_params(key, num_hidden, num_classes, num_layers, heads):
    """Deterministic xavier-ish init of all GATConv parameters."""
    params = []
    in_dim = num_hidden
    dims = []
    for l in range(num_layers):
        dims.append((in_dim, num_hidden, heads[l]))
        in_dim = num_hidden * heads[l]
    dims.append((in_dim, num_classes, heads[-1]))

    for (fi, fo, hd) in dims:
        key, kw, kl, kr = jax.random.split(key, 4)
        scale_w = (2.0 / (fi + hd * fo)) ** 0.5
        w = scale_w * jax.random.normal(kw, (fi, hd * fo), jnp.float32)
        scale_a = (2.0 / (1 + fo)) ** 0.5
        al = scale_a * jax.random.normal(kl, (hd, fo), jnp.float32)
        ar = scale_a * jax.random.normal(kr, (hd, fo), jnp.float32)
        params.append((w, al, ar))
    return params


def build_ring_adjacency(n):
    """Dense adjacency with self-loops + bidirectional ring edges. adj[i,j]: edge j->i."""
    idx = jnp.arange(n)
    adj = jnp.zeros((n, n), jnp.float32)
    adj = adj.at[idx, idx].set(1.0)                 # self-loops
    adj = adj.at[idx, (idx + 1) % n].set(1.0)       # right neighbor -> i
    adj = adj.at[idx, (idx - 1) % n].set(1.0)       # left neighbor  -> i
    return adj


if __name__ == "__main__":
    # Small, deterministic configuration.
    N = 32                # number of graph nodes
    num_hidden = 32
    num_classes = 8
    num_layers = 2
    heads = [2, 2, 2]     # num_layers hidden layers + 1 output layer
    use_l2norm = True

    key = jax.random.PRNGKey(0)
    k_in, k_params = jax.random.split(key)

    h0 = jax.random.normal(k_in, (N, num_hidden), jnp.float32)
    adj = build_ring_adjacency(N)
    params = init_gat_params(k_params, num_hidden, num_classes, num_layers, heads)

    h_out, logits = gat_forward(h0, params, adj,
                                num_layers=num_layers, heads=heads,
                                num_hidden=num_hidden, num_classes=num_classes,
                                use_l2norm=use_l2norm)
    jax.block_until_ready(h_out)
    jax.block_until_ready(logits)

    assert h_out.shape == (N, heads[num_layers - 1] * num_hidden)
    assert logits.shape == (N, num_classes)
    print("KERNEL_OK")
</pallas_src>

<mosaic_0001>
module attributes {stable_mosaic.version = 11 : i64} {
  func.func @_gat_fused_kernel(%arg0: memref<32x32xbf16, #tpu.memory_space<vmem>>, %arg1: memref<32x32xbf16, #tpu.memory_space<vmem>>, %arg2: memref<32x66xbf16, #tpu.memory_space<vmem>>, %arg3: memref<2x64xbf16, #tpu.memory_space<vmem>>, %arg4: memref<64x66xbf16, #tpu.memory_space<vmem>>, %arg5: memref<2x64xbf16, #tpu.memory_space<vmem>>, %arg6: memref<64x18xbf16, #tpu.memory_space<vmem>>, %arg7: memref<2x16xbf16, #tpu.memory_space<vmem>>, %arg8: memref<32x128xf32, #tpu.memory_space<vmem>>, %arg9: memref<32x128xf32, #tpu.memory_space<vmem>>) attributes {dimension_semantics = [], scalar_prefetch = 0 : i64, scratch_operands = 0 : i64, tpu.core_type = #tpu.core_type<tc>} {
    %c0 = arith.constant 0 : index
    %c0_0 = arith.constant 0 : index
    %0 = vector.load %arg0[%c0, %c0_0] : memref<32x32xbf16, #tpu.memory_space<vmem>>, vector<32x32xbf16>
    %c0_1 = arith.constant 0 : index
    %c0_2 = arith.constant 0 : index
    %1 = vector.load %arg2[%c0_1, %c0_2] : memref<32x66xbf16, #tpu.memory_space<vmem>>, vector<32x66xbf16>
    %c0_3 = arith.constant 0 : index
    %c0_4 = arith.constant 0 : index
    %2 = vector.load %arg3[%c0_3, %c0_4] : memref<2x64xbf16, #tpu.memory_space<vmem>>, vector<2x64xbf16>
    %cst = arith.constant dense<0.000000e+00> : vector<32x66xf32>
    %3 = tpu.matmul %0, %1, %cst {dimension_numbers = #tpu.dot_dimension_numbers<[1], [0], [0], [1], [0, 0, 1, 1], [], []>} : vector<32x32xbf16>, vector<32x66xbf16>, vector<32x66xf32> -> vector<32x66xf32>
    %4 = vector.extract_strided_slice %3 {offsets = [0, 0], sizes = [32, 64], strides = [1, 1]} : vector<32x66xf32> to vector<32x64xf32>
    %5 = vector.extract_strided_slice %3 {offsets = [0, 64], sizes = [32, 2], strides = [1, 1]} : vector<32x66xf32> to vector<32x2xf32>
    %6 = arith.truncf %4 : vector<32x64xf32> to vector<32x64xbf16>
    %cst_5 = arith.constant dense<0.000000e+00> : vector<2x32xf32>
    %7 = tpu.matmul %2, %6, %cst_5 {dimension_numbers = #tpu.dot_dimension_numbers<[1], [1], [0], [0], [0, 0, 1, 0], [], []>} : vector<2x64xbf16>, vector<32x64xbf16>, vector<2x32xf32> -> vector<2x32xf32>
    %8 = vector.extract_strided_slice %5 {offsets = [0, 0], sizes = [32, 1], strides = [1, 1]} : vector<32x2xf32> to vector<32x1xf32>
    %9 = vector.extract_strided_slice %7 {offsets = [0, 0], sizes = [1, 32], strides = [1, 1]} : vector<2x32xf32> to vector<1x32xf32>
    %10 = vector.broadcast %8 : vector<32x1xf32> to vector<32x32xf32>
    %11 = vector.broadcast %9 : vector<1x32xf32> to vector<32x32xf32>
    %12 = arith.addf %10, %11 : vector<32x32xf32>
    %cst_6 = arith.constant 0.000000e+00 : f32
    %13 = vector.broadcast %cst_6 : f32 to vector<32x32xf32>
    %14 = arith.cmpf ogt, %12, %13 : vector<32x32xf32>
    %cst_7 = arith.constant 2.000000e-01 : f32
    %15 = vector.broadcast %cst_7 : f32 to vector<32x32xf32>
    %16 = arith.mulf %15, %12 : vector<32x32xf32>
    %17 = arith.select %14, %12, %16 : vector<32x32xi1>, vector<32x32xf32>
    %c0_8 = arith.constant 0 : index
    %c0_9 = arith.constant 0 : index
    %18 = vector.load %arg1[%c0_8, %c0_9] : memref<32x32xbf16, #tpu.memory_space<vmem>>, vector<32x32xbf16>
    %19 = arith.extf %18 : vector<32x32xbf16> to vector<32x32xf32>
    %20 = arith.addf %17, %19 : vector<32x32xf32>
    %cst_10 = arith.constant dense<0xFF800000> : vector<32xf32>
    %21 = vector.multi_reduction <maximumf>, %20, %cst_10 [1] : vector<32x32xf32> to vector<32xf32>
    %22 = vector.shape_cast %21 : vector<32xf32> to vector<32x1xf32>
    %23 = vector.broadcast %22 : vector<32x1xf32> to vector<32x32xf32>
    %24 = arith.subf %20, %23 : vector<32x32xf32>
    %25 = math.exp %24 : vector<32x32xf32>
    %cst_11 = arith.constant dense<0.000000e+00> : vector<32xf32>
    %26 = vector.multi_reduction <add>, %25, %cst_11 [1] : vector<32x32xf32> to vector<32xf32>
    %27 = vector.shape_cast %26 : vector<32xf32> to vector<32x1xf32>
    %28 = tpu.reciprocal %27 {approx = true} : vector<32x1xf32> -> vector<32x1xf32>
    %29 = vector.extract_strided_slice %6 {offsets = [0, 0], sizes = [32, 32], strides = [1, 1]} : vector<32x64xbf16> to vector<32x32xbf16>
    %30 = arith.truncf %25 : vector<32x32xf32> to vector<32x32xbf16>
    %cst_12 = arith.constant dense<0.000000e+00> : vector<32x32xf32>
    %31 = tpu.matmul %30, %29, %cst_12 {dimension_numbers = #tpu.dot_dimension_numbers<[1], [0], [0], [1], [0, 0, 1, 1], [], []>} : vector<32x32xbf16>, vector<32x32xbf16>, vector<32x32xf32> -> vector<32x32xf32>
    %32 = vector.broadcast %28 : vector<32x1xf32> to vector<32x32xf32>
    %33 = arith.mulf %31, %32 : vector<32x32xf32>
    %cst_13 = arith.constant 0.000000e+00 : f32
    %34 = vector.broadcast %cst_13 : f32 to vector<32x32xf32>
    %35 = arith.cmpf ogt, %33, %34 : vector<32x32xf32>
    %cst_14 = arith.constant 0.000000e+00 : f32
    %36 = vector.broadcast %cst_14 : f32 to vector<32x32xf32>
    %37 = arith.minimumf %33, %36 : vector<32x32xf32>
    %38 = math.exp %37 : vector<32x32xf32>
    %cst_15 = arith.constant 1.000000e+00 : f32
    %39 = vector.broadcast %cst_15 : f32 to vector<32x32xf32>
    %40 = arith.subf %38, %39 : vector<32x32xf32>
    %41 = arith.select %35, %33, %40 : vector<32x32xi1>, vector<32x32xf32>
    %42 = vector.extract_strided_slice %5 {offsets = [0, 1], sizes = [32, 1], strides = [1, 1]} : vector<32x2xf32> to vector<32x1xf32>
    %43 = vector.extract_strided_slice %7 {offsets = [1, 0], sizes = [1, 32], strides = [1, 1]} : vector<2x32xf32> to vector<1x32xf32>
    %44 = vector.broadcast %42 : vector<32x1xf32> to vector<32x32xf32>
    %45 = vector.broadcast %43 : vector<1x32xf32> to vector<32x32xf32>
    %46 = arith.addf %44, %45 : vector<32x32xf32>
    %cst_16 = arith.constant 0.000000e+00 : f32
    %47 = vector.broadcast %cst_16 : f32 to vector<32x32xf32>
    %48 = arith.cmpf ogt, %46, %47 : vector<32x32xf32>
    %cst_17 = arith.constant 2.000000e-01 : f32
    %49 = vector.broadcast %cst_17 : f32 to vector<32x32xf32>
    %50 = arith.mulf %49, %46 : vector<32x32xf32>
    %51 = arith.select %48, %46, %50 : vector<32x32xi1>, vector<32x32xf32>
    %c0_18 = arith.constant 0 : index
    %c0_19 = arith.constant 0 : index
    %52 = vector.load %arg1[%c0_18, %c0_19] : memref<32x32xbf16, #tpu.memory_space<vmem>>, vector<32x32xbf16>
    %53 = arith.extf %52 : vector<32x32xbf16> to vector<32x32xf32>
    %54 = arith.addf %51, %53 : vector<32x32xf32>
    %cst_20 = arith.constant dense<0xFF800000> : vector<32xf32>
    %55 = vector.multi_reduction <maximumf>, %54, %cst_20 [1] : vector<32x32xf32> to vector<32xf32>
    %56 = vector.shape_cast %55 : vector<32xf32> to vector<32x1xf32>
    %57 = vector.broadcast %56 : vector<32x1xf32> to vector<32x32xf32>
    %58 = arith.subf %54, %57 : vector<32x32xf32>
    %59 = math.exp %58 : vector<32x32xf32>
    %cst_21 = arith.constant dense<0.000000e+00> : vector<32xf32>
    %60 = vector.multi_reduction <add>, %59, %cst_21 [1] : vector<32x32xf32> to vector<32xf32>
    %61 = vector.shape_cast %60 : vector<32xf32> to vector<32x1xf32>
    %62 = tpu.reciprocal %61 {approx = true} : vector<32x1xf32> -> vector<32x1xf32>
    %63 = vector.extract_strided_slice %6 {offsets = [0, 32], sizes = [32, 32], strides = [1, 1]} : vector<32x64xbf16> to vector<32x32xbf16>
    %64 = arith.truncf %59 : vector<32x32xf32> to vector<32x32xbf16>
    %cst_22 = arith.constant dense<0.000000e+00> : vector<32x32xf32>
    %65 = tpu.matmul %64, %63, %cst_22 {dimension_numbers = #tpu.dot_dimension_numbers<[1], [0], [0], [1], [0, 0, 1, 1], [], []>} : vector<32x32xbf16>, vector<32x32xbf16>, vector<32x32xf32> -> vector<32x32xf32>
    %66 = vector.broadcast %62 : vector<32x1xf32> to vector<32x32xf32>
    %67 = arith.mulf %65, %66 : vector<32x32xf32>
    %cst_23 = arith.constant 0.000000e+00 : f32
    %68 = vector.broadcast %cst_23 : f32 to vector<32x32xf32>
    %69 = arith.cmpf ogt, %67, %68 : vector<32x32xf32>
    %cst_24 = arith.constant 0.000000e+00 : f32
    %70 = vector.broadcast %cst_24 : f32 to vector<32x32xf32>
    %71 = arith.minimumf %67, %70 : vector<32x32xf32>
    %72 = math.exp %71 : vector<32x32xf32>
    %cst_25 = arith.constant 1.000000e+00 : f32
    %73 = vector.broadcast %cst_25 : f32 to vector<32x32xf32>
    %74 = arith.subf %72, %73 : vector<32x32xf32>
    %75 = arith.select %69, %67, %74 : vector<32x32xi1>, vector<32x32xf32>
    %76 = tpu.concatenate %41, %75 in 1 : vector<32x32xf32>, vector<32x32xf32> -> vector<32x64xf32>
    %77 = arith.truncf %76 : vector<32x64xf32> to vector<32x64xbf16>
    %c0_26 = arith.constant 0 : index
    %c0_27 = arith.constant 0 : index
    %78 = vector.load %arg4[%c0_26, %c0_27] : memref<64x66xbf16, #tpu.memory_space<vmem>>, vector<64x66xbf16>
    %c0_28 = arith.constant 0 : index
    %c0_29 = arith.constant 0 : index
    %79 = vector.load %arg5[%c0_28, %c0_29] : memref<2x64xbf16, #tpu.memory_space<vmem>>, vector<2x64xbf16>
    %cst_30 = arith.constant dense<0.000000e+00> : vector<32x66xf32>
    %80 = tpu.matmul %77, %78, %cst_30 {dimension_numbers = #tpu.dot_dimension_numbers<[1], [0], [0], [1], [0, 0, 1, 1], [], []>} : vector<32x64xbf16>, vector<64x66xbf16>, vector<32x66xf32> -> vector<32x66xf32>
    %81 = vector.extract_strided_slice %80 {offsets = [0, 0], sizes = [32, 64], strides = [1, 1]} : vector<32x66xf32> to vector<32x64xf32>
    %82 = vector.extract_strided_slice %80 {offsets = [0, 64], sizes = [32, 2], strides = [1, 1]} : vector<32x66xf32> to vector<32x2xf32>
    %83 = arith.truncf %81 : vector<32x64xf32> to vector<32x64xbf16>
    %cst_31 = arith.constant dense<0.000000e+00> : vector<2x32xf32>
    %84 = tpu.matmul %79, %83, %cst_31 {dimension_numbers = #tpu.dot_dimension_numbers<[1], [1], [0], [0], [0, 0, 1, 0], [], []>} : vector<2x64xbf16>, vector<32x64xbf16>, vector<2x32xf32> -> vector<2x32xf32>
    %85 = vector.extract_strided_slice %82 {offsets = [0, 0], sizes = [32, 1], strides = [1, 1]} : vector<32x2xf32> to vector<32x1xf32>
    %86 = vector.extract_strided_slice %84 {offsets = [0, 0], sizes = [1, 32], strides = [1, 1]} : vector<2x32xf32> to vector<1x32xf32>
    %87 = vector.broadcast %85 : vector<32x1xf32> to vector<32x32xf32>
    %88 = vector.broadcast %86 : vector<1x32xf32> to vector<32x32xf32>
    %89 = arith.addf %87, %88 : vector<32x32xf32>
    %cst_32 = arith.constant 0.000000e+00 : f32
    %90 = vector.broadcast %cst_32 : f32 to vector<32x32xf32>
    %91 = arith.cmpf ogt, %89, %90 : vector<32x32xf32>
    %cst_33 = arith.constant 2.000000e-01 : f32
    %92 = vector.broadcast %cst_33 : f32 to vector<32x32xf32>
    %93 = arith.mulf %92, %89 : vector<32x32xf32>
    %94 = arith.select %91, %89, %93 : vector<32x32xi1>, vector<32x32xf32>
    %c0_34 = arith.constant 0 : index
    %c0_35 = arith.constant 0 : index
    %95 = vector.load %arg1[%c0_34, %c0_35] : memref<32x32xbf16, #tpu.memory_space<vmem>>, vector<32x32xbf16>
    %96 = arith.extf %95 : vector<32x32xbf16> to vector<32x32xf32>
    %97 = arith.addf %94, %96 : vector<32x32xf32>
    %cst_36 = arith.constant dense<0xFF800000> : vector<32xf32>
    %98 = vector.multi_reduction <maximumf>, %97, %cst_36 [1] : vector<32x32xf32> to vector<32xf32>
    %99 = vector.shape_cast %98 : vector<32xf32> to vector<32x1xf32>
    %100 = vector.broadcast %99 : vector<32x1xf32> to vector<32x32xf32>
    %101 = arith.subf %97, %100 : vector<32x32xf32>
    %102 = math.exp %101 : vector<32x32xf32>
    %cst_37 = arith.constant dense<0.000000e+00> : vector<32xf32>
    %103 = vector.multi_reduction <add>, %102, %cst_37 [1] : vector<32x32xf32> to vector<32xf32>
    %104 = vector.shape_cast %103 : vector<32xf32> to vector<32x1xf32>
    %105 = tpu.reciprocal %104 {approx = true} : vector<32x1xf32> -> vector<32x1xf32>
    %106 = vector.extract_strided_slice %83 {offsets = [0, 0], sizes = [32, 32], strides = [1, 1]} : vector<32x64xbf16> to vector<32x32xbf16>
    %107 = arith.truncf %102 : vector<32x32xf32> to vector<32x32xbf16>
    %cst_38 = arith.constant dense<0.000000e+00> : vector<32x32xf32>
    %108 = tpu.matmul %107, %106, %cst_38 {dimension_numbers = #tpu.dot_dimension_numbers<[1], [0], [0], [1], [0, 0, 1, 1], [], []>} : vector<32x32xbf16>, vector<32x32xbf16>, vector<32x32xf32> -> vector<32x32xf32>
    %109 = vector.broadcast %105 : vector<32x1xf32> to vector<32x32xf32>
    %110 = arith.mulf %108, %109 : vector<32x32xf32>
    %cst_39 = arith.constant 0.000000e+00 : f32
    %111 = vector.broadcast %cst_39 : f32 to vector<32x32xf32>
    %112 = arith.cmpf ogt, %110, %111 : vector<32x32xf32>
    %cst_40 = arith.constant 0.000000e+00 : f32
    %113 = vector.broadcast %cst_40 : f32 to vector<32x32xf32>
    %114 = arith.minimumf %110, %113 : vector<32x32xf32>
    %115 = math.exp %114 : vector<32x32xf32>
    %cst_41 = arith.constant 1.000000e+00 : f32
    %116 = vector.broadcast %cst_41 : f32 to vector<32x32xf32>
    %117 = arith.subf %115, %116 : vector<32x32xf32>
    %118 = arith.select %112, %110, %117 : vector<32x32xi1>, vector<32x32xf32>
    %119 = vector.extract_strided_slice %82 {offsets = [0, 1], sizes = [32, 1], strides = [1, 1]} : vector<32x2xf32> to vector<32x1xf32>
    %120 = vector.extract_strided_slice %84 {offsets = [1, 0], sizes = [1, 32], strides = [1, 1]} : vector<2x32xf32> to vector<1x32xf32>
    %121 = vector.broadcast %119 : vector<32x1xf32> to vector<32x32xf32>
    %122 = vector.broadcast %120 : vector<1x32xf32> to vector<32x32xf32>
    %123 = arith.addf %121, %122 : vector<32x32xf32>
    %cst_42 = arith.constant 0.000000e+00 : f32
    %124 = vector.broadcast %cst_42 : f32 to vector<32x32xf32>
    %125 = arith.cmpf ogt, %123, %124 : vector<32x32xf32>
    %cst_43 = arith.constant 2.000000e-01 : f32
    %126 = vector.broadcast %cst_43 : f32 to vector<32x32xf32>
    %127 = arith.mulf %126, %123 : vector<32x32xf32>
    %128 = arith.select %125, %123, %127 : vector<32x32xi1>, vector<32x32xf32>
    %c0_44 = arith.constant 0 : index
    %c0_45 = arith.constant 0 : index
    %129 = vector.load %arg1[%c0_44, %c0_45] : memref<32x32xbf16, #tpu.memory_space<vmem>>, vector<32x32xbf16>
    %130 = arith.extf %129 : vector<32x32xbf16> to vector<32x32xf32>
    %131 = arith.addf %128, %130 : vector<32x32xf32>
    %cst_46 = arith.constant dense<0xFF800000> : vector<32xf32>
    %132 = vector.multi_reduction <maximumf>, %131, %cst_46 [1] : vector<32x32xf32> to vector<32xf32>
    %133 = vector.shape_cast %132 : vector<32xf32> to vector<32x1xf32>
    %134 = vector.broadcast %133 : vector<32x1xf32> to vector<32x32xf32>
    %135 = arith.subf %131, %134 : vector<32x32xf32>
    %136 = math.exp %135 : vector<32x32xf32>
    %cst_47 = arith.constant dense<0.000000e+00> : vector<32xf32>
    %137 = vector.multi_reduction <add>, %136, %cst_47 [1] : vector<32x32xf32> to vector<32xf32>
    %138 = vector.shape_cast %137 : vector<32xf32> to vector<32x1xf32>
    %139 = tpu.reciprocal %138 {approx = true} : vector<32x1xf32> -> vector<32x1xf32>
    %140 = vector.extract_strided_slice %83 {offsets = [0, 32], sizes = [32, 32], strides = [1, 1]} : vector<32x64xbf16> to vector<32x32xbf16>
    %141 = arith.truncf %136 : vector<32x32xf32> to vector<32x32xbf16>
    %cst_48 = arith.constant dense<0.000000e+00> : vector<32x32xf32>
    %142 = tpu.matmul %141, %140, %cst_48 {dimension_numbers = #tpu.dot_dimension_numbers<[1], [0], [0], [1], [0, 0, 1, 1], [], []>} : vector<32x32xbf16>, vector<32x32xbf16>, vector<32x32xf32> -> vector<32x32xf32>
    %143 = vector.broadcast %139 : vector<32x1xf32> to vector<32x32xf32>
    %144 = arith.mulf %142, %143 : vector<32x32xf32>
    %cst_49 = arith.constant 0.000000e+00 : f32
    %145 = vector.broadcast %cst_49 : f32 to vector<32x32xf32>
    %146 = arith.cmpf ogt, %144, %145 : vector<32x32xf32>
    %cst_50 = arith.constant 0.000000e+00 : f32
    %147 = vector.broadcast %cst_50 : f32 to vector<32x32xf32>
    %148 = arith.minimumf %144, %147 : vector<32x32xf32>
    %149 = math.exp %148 : vector<32x32xf32>
    %cst_51 = arith.constant 1.000000e+00 : f32
    %150 = vector.broadcast %cst_51 : f32 to vector<32x32xf32>
    %151 = arith.subf %149, %150 : vector<32x32xf32>
    %152 = arith.select %146, %144, %151 : vector<32x32xi1>, vector<32x32xf32>
    %153 = tpu.concatenate %118, %152 in 1 : vector<32x32xf32>, vector<32x32xf32> -> vector<32x64xf32>
    %cst_52 = arith.constant 0.000000e+00 : f32
    %154 = vector.broadcast %cst_52 : f32 to vector<32x64xf32>
    %155 = tpu.concatenate %153, %154 in 1 : vector<32x64xf32>, vector<32x64xf32> -> vector<32x128xf32>
    %c0_53 = arith.constant 0 : index
    %c0_54 = arith.constant 0 : index
    %156 = vector.load %arg8[%c0_53, %c0_54] : memref<32x128xf32, #tpu.memory_space<vmem>>, vector<32x128xf32>
    tpu.vector_store %arg8[%c0_53, %c0_54], %155 {strides = array<i32>} : memref<32x128xf32, #tpu.memory_space<vmem>>, vector<32x128xf32>,
    %157 = arith.truncf %153 : vector<32x64xf32> to vector<32x64xbf16>
    %c0_55 = arith.constant 0 : index
    %c0_56 = arith.constant 0 : index
    %158 = vector.load %arg6[%c0_55, %c0_56] : memref<64x18xbf16, #tpu.memory_space<vmem>>, vector<64x18xbf16>
    %c0_57 = arith.constant 0 : index
    %c0_58 = arith.constant 0 : index
    %159 = vector.load %arg7[%c0_57, %c0_58] : memref<2x16xbf16, #tpu.memory_space<vmem>>, vector<2x16xbf16>
    %cst_59 = arith.constant dense<0.000000e+00> : vector<32x18xf32>
    %160 = tpu.matmul %157, %158, %cst_59 {dimension_numbers = #tpu.dot_dimension_numbers<[1], [0], [0], [1], [0, 0, 1, 1], [], []>} : vector<32x64xbf16>, vector<64x18xbf16>, vector<32x18xf32> -> vector<32x18xf32>
    %161 = vector.extract_strided_slice %160 {offsets = [0, 0], sizes = [32, 16], strides = [1, 1]} : vector<32x18xf32> to vector<32x16xf32>
    %162 = vector.extract_strided_slice %160 {offsets = [0, 16], sizes = [32, 2], strides = [1, 1]} : vector<32x18xf32> to vector<32x2xf32>
    %163 = arith.truncf %161 : vector<32x16xf32> to vector<32x16xbf16>
    %cst_60 = arith.constant dense<0.000000e+00> : vector<2x32xf32>
    %164 = tpu.matmul %159, %163, %cst_60 {dimension_numbers = #tpu.dot_dimension_numbers<[1], [1], [0], [0], [0, 0, 1, 0], [], []>} : vector<2x16xbf16>, vector<32x16xbf16>, vector<2x32xf32> -> vector<2x32xf32>
    %165 = vector.extract_strided_slice %162 {offsets = [0, 0], sizes = [32, 1], strides = [1, 1]} : vector<32x2xf32> to vector<32x1xf32>
    %166 = vector.extract_strided_slice %164 {offsets = [0, 0], sizes = [1, 32], strides = [1, 1]} : vector<2x32xf32> to vector<1x32xf32>
    %167 = vector.broadcast %165 : vector<32x1xf32> to vector<32x32xf32>
    %168 = vector.broadcast %166 : vector<1x32xf32> to vector<32x32xf32>
    %169 = arith.addf %167, %168 : vector<32x32xf32>
    %cst_61 = arith.constant 0.000000e+00 : f32
    %170 = vector.broadcast %cst_61 : f32 to vector<32x32xf32>
    %171 = arith.cmpf ogt, %169, %170 : vector<32x32xf32>
    %cst_62 = arith.constant 2.000000e-01 : f32
    %172 = vector.broadcast %cst_62 : f32 to vector<32x32xf32>
    %173 = arith.mulf %172, %169 : vector<32x32xf32>
    %174 = arith.select %171, %169, %173 : vector<32x32xi1>, vector<32x32xf32>
    %c0_63 = arith.constant 0 : index
    %c0_64 = arith.constant 0 : index
    %175 = vector.load %arg1[%c0_63, %c0_64] : memref<32x32xbf16, #tpu.memory_space<vmem>>, vector<32x32xbf16>
    %176 = arith.extf %175 : vector<32x32xbf16> to vector<32x32xf32>
    %177 = arith.addf %174, %176 : vector<32x32xf32>
    %cst_65 = arith.constant dense<0xFF800000> : vector<32xf32>
    %178 = vector.multi_reduction <maximumf>, %177, %cst_65 [1] : vector<32x32xf32> to vector<32xf32>
    %179 = vector.shape_cast %178 : vector<32xf32> to vector<32x1xf32>
    %180 = vector.broadcast %179 : vector<32x1xf32> to vector<32x32xf32>
    %181 = arith.subf %177, %180 : vector<32x32xf32>
    %182 = math.exp %181 : vector<32x32xf32>
    %cst_66 = arith.constant dense<0.000000e+00> : vector<32xf32>
    %183 = vector.multi_reduction <add>, %182, %cst_66 [1] : vector<32x32xf32> to vector<32xf32>
    %184 = vector.shape_cast %183 : vector<32xf32> to vector<32x1xf32>
    %185 = tpu.reciprocal %184 {approx = true} : vector<32x1xf32> -> vector<32x1xf32>
    %186 = vector.extract_strided_slice %163 {offsets = [0, 0], sizes = [32, 8], strides = [1, 1]} : vector<32x16xbf16> to vector<32x8xbf16>
    %187 = arith.truncf %182 : vector<32x32xf32> to vector<32x32xbf16>
    %cst_67 = arith.constant dense<0.000000e+00> : vector<32x8xf32>
    %188 = tpu.matmul %187, %186, %cst_67 {dimension_numbers = #tpu.dot_dimension_numbers<[1], [0], [0], [1], [0, 0, 1, 1], [], []>} : vector<32x32xbf16>, vector<32x8xbf16>, vector<32x8xf32> -> vector<32x8xf32>
    %189 = vector.broadcast %185 : vector<32x1xf32> to vector<32x8xf32>
    %190 = arith.mulf %188, %189 : vector<32x8xf32>
    %191 = vector.extract_strided_slice %162 {offsets = [0, 1], sizes = [32, 1], strides = [1, 1]} : vector<32x2xf32> to vector<32x1xf32>
    %192 = vector.extract_strided_slice %164 {offsets = [1, 0], sizes = [1, 32], strides = [1, 1]} : vector<2x32xf32> to vector<1x32xf32>
    %193 = vector.broadcast %191 : vector<32x1xf32> to vector<32x32xf32>
    %194 = vector.broadcast %192 : vector<1x32xf32> to vector<32x32xf32>
    %195 = arith.addf %193, %194 : vector<32x32xf32>
    %cst_68 = arith.constant 0.000000e+00 : f32
    %196 = vector.broadcast %cst_68 : f32 to vector<32x32xf32>
    %197 = arith.cmpf ogt, %195, %196 : vector<32x32xf32>
    %cst_69 = arith.constant 2.000000e-01 : f32
    %198 = vector.broadcast %cst_69 : f32 to vector<32x32xf32>
    %199 = arith.mulf %198, %195 : vector<32x32xf32>
    %200 = arith.select %197, %195, %199 : vector<32x32xi1>, vector<32x32xf32>
    %c0_70 = arith.constant 0 : index
    %c0_71 = arith.constant 0 : index
    %201 = vector.load %arg1[%c0_70, %c0_71] : memref<32x32xbf16, #tpu.memory_space<vmem>>, vector<32x32xbf16>
    %202 = arith.extf %201 : vector<32x32xbf16> to vector<32x32xf32>
    %203 = arith.addf %200, %202 : vector<32x32xf32>
    %cst_72 = arith.constant dense<0xFF800000> : vector<32xf32>
    %204 = vector.multi_reduction <maximumf>, %203, %cst_72 [1] : vector<32x32xf32> to vector<32xf32>
    %205 = vector.shape_cast %204 : vector<32xf32> to vector<32x1xf32>
    %206 = vector.broadcast %205 : vector<32x1xf32> to vector<32x32xf32>
    %207 = arith.subf %203, %206 : vector<32x32xf32>
    %208 = math.exp %207 : vector<32x32xf32>
    %cst_73 = arith.constant dense<0.000000e+00> : vector<32xf32>
    %209 = vector.multi_reduction <add>, %208, %cst_73 [1] : vector<32x32xf32> to vector<32xf32>
    %210 = vector.shape_cast %209 : vector<32xf32> to vector<32x1xf32>
    %211 = tpu.reciprocal %210 {approx = true} : vector<32x1xf32> -> vector<32x1xf32>
    %212 = vector.extract_strided_slice %163 {offsets = [0, 8], sizes = [32, 8], strides = [1, 1]} : vector<32x16xbf16> to vector<32x8xbf16>
    %213 = arith.truncf %208 : vector<32x32xf32> to vector<32x32xbf16>
    %cst_74 = arith.constant dense<0.000000e+00> : vector<32x8xf32>
    %214 = tpu.matmul %213, %212, %cst_74 {dimension_numbers = #tpu.dot_dimension_numbers<[1], [0], [0], [1], [0, 0, 1, 1], [], []>} : vector<32x32xbf16>, vector<32x8xbf16>, vector<32x8xf32> -> vector<32x8xf32>
    %215 = vector.broadcast %211 : vector<32x1xf32> to vector<32x8xf32>
    %216 = arith.mulf %214, %215 : vector<32x8xf32>
    %217 = arith.addf %190, %216 : vector<32x8xf32>
    %cst_75 = arith.constant 5.000000e-01 : f32
    %218 = vector.broadcast %cst_75 : f32 to vector<32x8xf32>
    %219 = arith.mulf %217, %218 : vector<32x8xf32>
    %220 = arith.mulf %219, %219 : vector<32x8xf32>
    %cst_76 = arith.constant dense<0.000000e+00> : vector<32xf32>
    %221 = vector.multi_reduction <add>, %220, %cst_76 [1] : vector<32x8xf32> to vector<32xf32>
    %222 = vector.shape_cast %221 : vector<32xf32> to vector<32x1xf32>
    %223 = math.sqrt %222 : vector<32x1xf32>
    %cst_77 = arith.constant 9.99999996E-13 : f32
    %224 = vector.broadcast %cst_77 : f32 to vector<32x1xf32>
    %225 = arith.maximumf %223, %224 : vector<32x1xf32>
    %226 = vector.broadcast %225 : vector<32x1xf32> to vector<32x8xf32>
    %227 = arith.divf %219, %226 : vector<32x8xf32>
    %cst_78 = arith.constant 0.000000e+00 : f32
    %228 = vector.broadcast %cst_78 : f32 to vector<32x120xf32>
    %229 = tpu.concatenate %227, %228 in 1 : vector<32x8xf32>, vector<32x120xf32> -> vector<32x128xf32>
    %c0_79 = arith.constant 0 : index
    %c0_80 = arith.constant 0 : index
    %230 = vector.load %arg9[%c0_79, %c0_80] : memref<32x128xf32, #tpu.memory_space<vmem>>, vector<32x128xf32>
    tpu.vector_store %arg9[%c0_79, %c0_80], %229 {strides = array<i32>} : memref<32x128xf32, #tpu.memory_space<vmem>>, vector<32x128xf32>,
    return
  }
}

</mosaic_0001>

<bundles_post_ra>
// kernel: tpu_custom_call.1
= control target key start
LH: loop header
LB: loop body
LE: loop exit
PB: predicated region body
PF: predicated region fallthrough
CT: control target
= control target key end

     0   :  { %15 = vsyncpa [#allocation3], 0  ;;  %s2820_s0 = inlined_call_operand.hbm [shape: bf16[32,32], index: 0, kind: input, shape index: {}]   ;;  %s2821_s1 = inlined_call_operand.hbm [shape: bf16[32,32], index: 1, kind: input, shape index: {}]   ;;  %s2822_s2 = inlined_call_operand.hbm [shape: bf16[32,66], index: 2, kind: input, shape index: {}]   ;;  %s2823_s3 = inlined_call_operand.hbm [shape: bf16[2,64], index: 3, kind: input, shape index: {}]   ;;  %s2824_s4 = inlined_call_operand.hbm [shape: bf16[64,66], index: 4, kind: input, shape index: {}]   ;;  %s2825_s5 = inlined_call_operand.hbm [shape: bf16[2,64], index: 5, kind: input, shape index: {}]   ;;  %s2826_s6 = inlined_call_operand.hbm [shape: bf16[64,18], index: 6, kind: input, shape index: {}]   ;;  %s2827_s7 = inlined_call_operand.hbm [shape: bf16[2,16], index: 7, kind: input, shape index: {}]   ;;  %s2828_s8 = inlined_call_operand.hbm [shape: f32[32,128], index: 8, kind: output, shape index: {0}]   ;;  %s2829_s9 = inlined_call_operand.hbm [shape: f32[32,128], index: 9, kind: output, shape index: {1}]  }
   0x1   :  { %16 = vsyncpa [#allocation6], 0 }
   0x2   :  { %17 = vsyncpa [#allocation9], 0 }
   0x3   :  { %18 = vsyncpa [#allocation12], 0 }
   0x4   :  { %19 = vsyncpa [#allocation15], 0 }
   0x5   :  { %20 = vsyncpa [#allocation4], 0 }
   0x6   :  { %21 = vsyncpa [#allocation18], 0  ;;  %s2366_s30 = smov [#allocation5]   ;;  %s2367_s11 = smov [#allocation8]  }
   0x7   :  { %s39_s10 = sshll.u32 %s2366_s30, 4  ;;  %s64_s12 = sshll.u32 %s2367_s11, 4  ;;  %s40_s10 = int_to_ptr.vmem [resolvable:$true] %s39_s10  ;;  %s2439_s12 = int_to_ptr.vmem [resolvable:$true] %s64_s12 }
   0x8   :  { %s2132_s15 = scalar_lea.hbm %s2821_s1, 256 }
   0x9   :  { %p2133_p0 = scmp.ne.s32.totalorder %s2821_s1, %s2132_s15  ;;  %p2136_p1 = scmp.lt.u32.totalorder %s2132_s15, %s2821_s1 }
   0xb   :  { %p2138_p2 = pnand %p2136_p1, %p2133_p0 }
   0xd   :  { %2141 = shalt.err (!%p2138_p2)
}
   0xe   :  { %s2142_s20 = scalar_lea.vmem %s40_s10, 256  ;;  %p2147_p4 = scmp.lt.s32.totalorder %s40_s10, %s40_s10 }
   0xf   :  { %p2143_p3 = scmp.ne.s32.totalorder %s40_s10, %s2142_s20  ;;  %p2148_p5 = scmp.lt.s32.totalorder %s2142_s20, %s2142_s20 }
  0x11   :  { %p2149_p6 = por %p2148_p5, %p2147_p4 }
  0x13   :  { %p2150_p7 = pnand %p2149_p6, %p2143_p3 }
  0x15   :  { %2153 = shalt.err (!%p2150_p7)
}
  0x16   :  { %s2368_s21 = smov 64   ;;  %s2369_s22 = smov 4  }
  0x17   :  { %45 = dma.hbm_to_vmem [thread:$0]  %s2821_s1, 256, %s40_s10, [#allocation6], %s2368_s21, %s2368_s21, %s2369_s22  }
  0x18   :  { %s2154_s27 = scalar_lea.hbm %s2823_s3, 16 }
  0x19   :  { %p2155_p8 = scmp.ne.s32.totalorder %s2823_s3, %s2154_s27  ;;  %p2158_p9 = scmp.lt.u32.totalorder %s2154_s27, %s2823_s3 }
  0x1b   :  { %p2160_p10 = pnand %p2158_p9, %p2155_p8 }
  0x1d   :  { %2163 = shalt.err (!%p2160_p10)
}
  0x1e   :  { %s2164_s13 = scalar_lea.vmem %s2439_s12, 16  ;;  %s2168_s1 = scalar_lea.vmem %s2439_s12, 32 }
  0x1f   :  { %p2165_p11 = scmp.ne.s32.totalorder %s2439_s12, %s2164_s13  ;;  %p2169_p12 = scmp.lt.s32.totalorder %s2439_s12, %s2439_s12 }
  0x20   :  { %p2170_p13 = scmp.lt.s32.totalorder %s2168_s1, %s2164_s13 }
  0x22   :  { %p2171_p0 = por %p2170_p13, %p2169_p12 }
  0x24   :  { %p2172_p1 = pnand %p2171_p0, %p2165_p11 }
  0x26   :  { %2175 = shalt.err (!%p2172_p1)
}
  0x27   :  { %67 = dma.hbm_to_vmem [thread:$0]  %s2823_s3, 16, %s2439_s12, [#allocation9]  }
  0x28   :  { %s2370_s15 = smov [#allocation11]   ;;  %s2371_s17 = smov [#allocation2]  }
  0x29   :  { %s86_s16 = sshll.u32 %s2370_s15, 4  ;;  %s27_s18 = sshll.u32 %s2371_s17, 4  ;;  %s87_s16 = int_to_ptr.vmem [resolvable:$true] %s86_s16  ;;  %s2474_s18 = int_to_ptr.vmem [resolvable:$true] %s27_s18 }
  0x2a   :  { %s2176_s23 = scalar_lea.hbm %s2825_s5, 16 }
  0x2b   :  { %p2177_p2 = scmp.ne.s32.totalorder %s2825_s5, %s2176_s23  ;;  %p2180_p3 = scmp.lt.u32.totalorder %s2176_s23, %s2825_s5 }
  0x2d   :  { %p2182_p4 = pnand %p2180_p3, %p2177_p2 }
  0x2f   :  { %2185 = shalt.err (!%p2182_p4)
}
  0x30   :  { %s2186_s3 = scalar_lea.vmem %s87_s16, 16  ;;  %s2190_s12 = scalar_lea.vmem %s87_s16, 32 }
  0x31   :  { %p2187_p5 = scmp.ne.s32.totalorder %s87_s16, %s2186_s3  ;;  %p2191_p6 = scmp.lt.s32.totalorder %s87_s16, %s87_s16 }
  0x32   :  { %p2192_p7 = scmp.lt.s32.totalorder %s2190_s12, %s2186_s3 }
  0x34   :  { %p2193_p8 = por %p2192_p7, %p2191_p6 }
  0x36   :  { %p2194_p9 = pnand %p2193_p8, %p2187_p5 }
  0x38   :  { %2197 = shalt.err (!%p2194_p9)
}
  0x39   :  { %89 = dma.hbm_to_vmem [thread:$0]  %s2825_s5, 16, %s87_s16, [#allocation12]  }
  0x3a   :  { %s2198_s13 = scalar_lea.hbm %s2820_s0, 256 }
  0x3b   :  { %p2199_p10 = scmp.ne.s32.totalorder %s2820_s0, %s2198_s13  ;;  %p2202_p11 = scmp.lt.u32.totalorder %s2198_s13, %s2820_s0 }
  0x3d   :  { %p2204_p12 = pnand %p2202_p11, %p2199_p10 }
  0x3f   :  { %2207 = shalt.err (!%p2204_p12)
}
  0x40   :  { %s2208_s17 = scalar_lea.vmem %s2474_s18, 256  ;;  %p2213_p0 = scmp.lt.s32.totalorder %s2474_s18, %s2474_s18 }
  0x41   :  { %p2209_p13 = scmp.ne.s32.totalorder %s2474_s18, %s2208_s17  ;;  %p2214_p1 = scmp.lt.s32.totalorder %s2208_s17, %s2208_s17 }
  0x43   :  { %p2215_p2 = por %p2214_p1, %p2213_p0 }
  0x45   :  { %p2216_p3 = pnand %p2215_p2, %p2209_p13 }
  0x47   :  { %2219 = shalt.err (!%p2216_p3)
}
  0x48   :  { %33 = dma.hbm_to_vmem [thread:$0]  %s2820_s0, 256, %s2474_s18, [#allocation3], %s2368_s21, %s2368_s21, %s2369_s22  }
  0x49   :  { %s2372_s19 = smov [#allocation7]   ;;  %s2373_s23 = smov [#allocation10]  }
  0x4a   :  { %s51_s20 = sshll.u32 %s2372_s19, 4  ;;  %s73_s24 = sshll.u32 %s2373_s23, 4  ;;  %s52_s20 = int_to_ptr.vmem [resolvable:$true] %s51_s20  ;;  %s2508_s24 = int_to_ptr.vmem [resolvable:$true] %s73_s24 }
  0x4b   :  { %s2220_s27 = scalar_lea.hbm %s2822_s2, 256 }
  0x4c   :  { %p2221_p4 = scmp.ne.s32.totalorder %s2822_s2, %s2220_s27  ;;  %p2224_p5 = scmp.lt.u32.totalorder %s2220_s27, %s2822_s2 }
  0x4e   :  { %p2226_p6 = pnand %p2224_p5, %p2221_p4 }
  0x50   :  { %2229 = shalt.err (!%p2226_p6)
}
  0x51   :  { %s2230_s0 = scalar_lea.vmem %s52_s20, 256  ;;  %p2235_p8 = scmp.lt.s32.totalorder %s52_s20, %s52_s20 }
  0x52   :  { %p2231_p7 = scmp.ne.s32.totalorder %s52_s20, %s2230_s0  ;;  %p2236_p9 = scmp.lt.s32.totalorder %s2230_s0, %s2230_s0 }
  0x54   :  { %p2237_p10 = por %p2236_p9, %p2235_p8 }
  0x56   :  { %p2238_p11 = pnand %p2237_p10, %p2231_p7 }
  0x58   :  { %2241 = shalt.err (!%p2238_p11)
}
  0x59   :  { %57 = dma.hbm_to_vmem [thread:$0]  %s2822_s2, 256, %s52_s20, [#allocation6], %s2368_s21, %s2368_s21, %s2369_s22  }
  0x5a   :  { %s2242_s1 = scalar_lea.hbm %s2824_s4, 512 }
  0x5b   :  { %p2243_p12 = scmp.ne.s32.totalorder %s2824_s4, %s2242_s1  ;;  %p2246_p13 = scmp.lt.u32.totalorder %s2242_s1, %s2824_s4 }
  0x5d   :  { %p2248_p0 = pnand %p2246_p13, %p2243_p12 }
  0x5f   :  { %2251 = shalt.err (!%p2248_p0)
}
  0x60   :  { %s2252_s5 = scalar_lea.vmem %s2508_s24, 512  ;;  %p2257_p2 = scmp.lt.s32.totalorder %s2508_s24, %s2508_s24 }
  0x61   :  { %p2253_p1 = scmp.ne.s32.totalorder %s2508_s24, %s2252_s5  ;;  %p2258_p3 = scmp.lt.s32.totalorder %s2252_s5, %s2252_s5 }
  0x63   :  { %p2259_p4 = por %p2258_p3, %p2257_p2 }
  0x65   :  { %p2260_p5 = pnand %p2259_p4, %p2253_p1 }
  0x67   :  { %2263 = shalt.err (!%p2260_p5)
}
  0x68   :  { %79 = dma.hbm_to_vmem [thread:$0]  %s2824_s4, 512, %s2508_s24, [#allocation9], %s2368_s21, %s2368_s21, %s2369_s22  }
  0x69   :  { %s2374_s19 = smov [#allocation13]   ;;  %s2375_s23 = smov [#allocation14]  }
  0x6a   :  { %s95_s20 = sshll.u32 %s2374_s19, 4  ;;  %s108_s25 = sshll.u32 %s2375_s23, 4  ;;  %s96_s20 = int_to_ptr.vmem [resolvable:$true] %s95_s20  ;;  %s109_s25 = int_to_ptr.vmem [resolvable:$true] %s108_s25 }
  0x6b   :  { %s2264_s3 = scalar_lea.hbm %s2826_s6, 512 }
  0x6c   :  { %p2265_p6 = scmp.ne.s32.totalorder %s2826_s6, %s2264_s3  ;;  %p2268_p7 = scmp.lt.u32.totalorder %s2264_s3, %s2826_s6 }
  0x6e   :  { %p2270_p8 = pnand %p2268_p7, %p2265_p6 }
  0x70   :  { %2273 = shalt.err (!%p2270_p8)
}
  0x71   :  { %s2274_s4 = scalar_lea.vmem %s96_s20, 512  ;;  %p2279_p10 = scmp.lt.s32.totalorder %s96_s20, %s96_s20 }
  0x72   :  { %p2275_p9 = scmp.ne.s32.totalorder %s96_s20, %s2274_s4  ;;  %p2280_p11 = scmp.lt.s32.totalorder %s2274_s4, %s2274_s4 }
  0x74   :  { %p2281_p12 = por %p2280_p11, %p2279_p10 }
  0x76   :  { %p2282_p13 = pnand %p2281_p12, %p2275_p9 }
  0x78   :  { %2285 = shalt.err (!%p2282_p13)
}
  0x79   :  { %101 = dma.hbm_to_vmem [thread:$0]  %s2826_s6, 512, %s96_s20, [#allocation12], %s2368_s21, %s2368_s21, %s2369_s22  }
  0x7a   :  { %s2286_s13 = scalar_lea.hbm %s2827_s7, 16 }
  0x7b   :  { %p2287_p0 = scmp.ne.s32.totalorder %s2827_s7, %s2286_s13  ;;  %p2290_p1 = scmp.lt.u32.totalorder %s2286_s13, %s2827_s7 }
  0x7d   :  { %p2292_p2 = pnand %p2290_p1, %p2287_p0 }
  0x7f   :  { %2295 = shalt.err (!%p2292_p2)
}
  0x80   :  { %s2296_s17 = scalar_lea.vmem %s109_s25, 16  ;;  %s2300_s5 = scalar_lea.vmem %s109_s25, 32 }
  0x81   :  { %p2297_p3 = scmp.ne.s32.totalorder %s109_s25, %s2296_s17  ;;  %p2301_p4 = scmp.lt.s32.totalorder %s109_s25, %s109_s25 }
  0x82   :  { %p2302_p5 = scmp.lt.s32.totalorder %s2300_s5, %s2296_s17 }
  0x84   :  { %p2303_p6 = por %p2302_p5, %p2301_p4 }
  0x86   :  { %p2304_p7 = pnand %p2303_p6, %p2297_p3 }
  0x88   :  { %2307 = shalt.err (!%p2304_p7)
}
  0x89   :  { %111 = dma.hbm_to_vmem [thread:$0]  %s2827_s7, 16, %s109_s25, [#allocation15]  }
  0x8a   :  { %2352 = dma.done.wait [#allocation3], 256  }
  0x8b   :  { %2353 = vsyncadd [#allocation3], 4294967040 }
  0x8c   :  { %2354 = dma.done.wait [#allocation6], 512  }
  0x8d   :  { %2355 = vsyncadd [#allocation6], 4294966784 }
  0x8e   :  { %2356 = dma.done.wait [#allocation9], 528  }
  0x8f   :  { %2357 = vsyncadd [#allocation9], 4294966768 }
  0x90   :  { %2358 = dma.done.wait [#allocation12], 528  }
  0x91   :  { %2359 = vsyncadd [#allocation12], 4294966768 }
  0x92   :  { %2360 = dma.done.wait [#allocation15], 16  }
  0x93   :  { %2361 = vsyncadd [#allocation15], 4294967280  ;;  %v2376_v0 = vmov 64   ;;  %v1976_v1 = vld [vmem:[#allocation7] sm:$0xff]   ;;  %v1977_v2 = vld [vmem:[#allocation7 + $0x8] sm:$0xff]   ;;  %vm168_vm0 = vcmask 261120   ;;  %v296_v18 = vlaneseq }
  0x94   :  { %1954 = vset.pattern.permute.xlu1 %v2376_v0  ;;  %1955 = vset.pattern.permute.xlu0 %v2376_v0  ;;  %v1978_v3 = vld [vmem:[#allocation2] sm:$0xff]   ;;  %v1979_v4 = vld [vmem:[#allocation2 + $0x8] sm:$0xff]   ;;  %v2377_v5 = vmov 0.0   ;;  %vm2378_vm1 = vmmov 0   ;;  %vm226_vm2 = vcmask 523264   ;;  %v2379_v13 = vmov 65  }
  0x95   :  { %1827 = vmatprep.subr.bf16.mxu0 %v1976_v1  ;;  %1831 = vmatprep.mubr.msk.bf16.mxu0 %vm168_vm0, %v1978_v3  ;;  %v145_v15 = vld [vmem:[#allocation8] sm:$0x1]  ;;  %v297_v21 = vshrl.u32 %v296_v18, 7  ;;  %v1776_v27 = vld [vmem:[#allocation5 + $0x8] sm:$0xff]   ;;  %s2380_s7 = smov 96   ;;  %s2381_s22 = smov 32  }
  0x96   :  { %1828 = vmatpush3.bf16.msra.mxu0 %v1976_v1  ;;  %1835 = vmatprep.subr.bf16.mxu1 %v2377_v5  ;;  %v1761_v26 = vld [vmem:[#allocation5] sm:$0xff]   ;;  %v2603_v36 = vunpack.c.l.bf16 %v1776_v27  ;;  %v2605_v37 = vunpack.c.h.bf16 %v1776_v27  ;;  %s2384_s2 = smov 120   ;;  %s2385_s16 = smov [#allocation16]  }
  0x97   :  { %1829 = vmatprep.subr.bf16.mxu0 %v1977_v2  ;;  %1839 = vmatprep.mubr.msk.bf16.mxu1 %vm2378_vm1, %v2377_v5  ;;  %v2593_v24 = vsub.s32 0, %v297_v21  ;;  %v2595_v25 = vsub.s32 1, %v297_v21  ;;  %v2599_v34 = vunpack.c.h.bf16 %v1761_v26  ;;  %v2601_v35 = vunpack.c.l.bf16 %v1761_v26  ;;  %s1679_s19 = sshll.u32 %s2385_s16, 4  ;;  %s1680_s19 = int_to_ptr.vmem [resolvable:$true] %s1679_s19 }
  0x98   :  { %s2308_s20 = scalar_lea.vmem %s1680_s19, 512  ;;  %p2313_p9 = scmp.lt.s32.totalorder %s1680_s19, %s1680_s19 }
  0x99   :  { %p2309_p8 = scmp.ne.s32.totalorder %s1680_s19, %s2308_s20  ;;  %p2314_p10 = scmp.lt.s32.totalorder %s2308_s20, %s2308_s20 }
  0x9a   :  { %1830 = vmatpush3.bf16.msra.mxu0 %v1977_v2 }
  0x9b   :  { %p2315_p11 = por %p2314_p10, %p2313_p9 }
  0x9d   :  { %1832 = vmatmul.mubr.msk.bf16.vlgmr.msra.gmra.mrb[0].mxu0 %vm168_vm0, %v1979_v4  ;;  %p2316_p12 = pnand %p2315_p11, %p2309_p8 }
 0x170   :  { %v1833_v6 = vpop.f32.mrb[0].mxu0 }
 0x171   :  { %288 = vperm.xlu1 %1954, %v1833_v6   ;;  %v209_v7 = vpop.f32.mrb[1].mxu0 }
 0x172   :  { %278 = vperm.xlu0 %1955, %v209_v7   ;;  %v1834_v8 = vpop.f32.mrb[2].mxu0 }
 0x173   :  { %v2579_v9 = vpack.c.bf16 %v1834_v8, %v1833_v6  ;;  %v212_v10 = vpop.f32.mrb[3].mxu0 }
 0x174   :  { %v2581_v11 = vpack.c.bf16 %v212_v10, %v209_v7 }
 0x175   :  { %293 = vperm.xlu1 %1954, %v1834_v8   ;;  %v234_v14 = vsel %vm226_vm2, %v2579_v9, 0 }
 0x176   :  { %283 = vperm.xlu0 %1955, %v212_v10   ;;  %1843 = vmatprep.subr.bf16.mxu0 %v2581_v11  ;;  %v231_v12 = vsel %vm226_vm2, %v2581_v11, 0 }
 0x177   :  { %1836 = vmatpush3.bf16.xpose.msra.mxu1 %v231_v12  ;;  %1844 = vmatpush3.bf16.msra.mxu0 %v2581_v11 }
 0x178   :  { %1845 = vmatprep.subr.bf16.mxu0 %v2579_v9  ;;  %1837 = vmatprep.subr.bf16.mxu1 %v2377_v5 }
 0x179   :  { %1957 = vset.pattern.permute.xlu1 %v2379_v13 }
 0x17a   :  { %458 = vperm.xlu1 %1957, %v212_v10   ;;  %1956 = vset.pattern.permute.xlu0 %v2379_v13 }
 0x17b   :  { %454 = vperm.xlu0 %1956, %v209_v7   ;;  %1846 = vmatpush3.bf16.msra.mxu0 %v2579_v9 }
 0x17e   :  { %462 = vperm.xlu1 %1957, %v1833_v6  }
 0x17f   :  { %466 = vperm.xlu0 %1956, %v1834_v8   ;;  %1838 = vmatpush3.bf16.xpose.msra.mxu1 %v234_v14 }
 0x186   :  { %1840 = vmatmul.mubr.msk.bf16.vlgmr.msra.gmra.mrb[0].mxu1 %vm226_vm2, %v145_v15 }
 0x1f0   :  { %v289_v16 = vpop.permute.xlu1 %288 }
 0x1f1   :  { %v279_v17 = vpop.permute.xlu0 %278 }
 0x1f4   :  { %v294_v19 = vpop.permute.xlu1 %293 }
 0x1f5   :  { %v284_v20 = vpop.permute.xlu0 %283 }
 0x1f9   :  { %v459_v22 = vpop.permute.xlu1 %458 }
 0x1fa   :  { %v455_v23 = vpop.permute.xlu0 %454 }
 0x1fd   :  { %v463_v32 = vpop.permute.xlu1 %462 }
 0x1fe   :  { %v467_v38 = vpop.permute.xlu0 %466 }
 0x259   :  { %v270_v28 = vpop.f32.mrb[0].mxu1 }
 0x25a   :  { %v299_v29 = vrot.slane %v270_v28, %v2593_v24  ;;  %v472_v30 = vrot.slane %v270_v28, %v2595_v25  ;;  %v1841_v31 = vpop.f32.mrb[1].mxu1 }
 0x25b   :  { %v273_v33 = vpop.f32.mrb[2].mxu1 }
 0x25c   :  { %v1842_v39 = vpop.f32.mrb[3].mxu1  ;;  %v301_v40 = vadd.f32 %v299_v29, %v284_v20  ;;  %v300_v41 = vadd.f32 %v299_v29, %v279_v17  ;;  %v302_v42 = vadd.f32 %v299_v29, %v289_v16  ;;  %v303_v43 = vadd.f32 %v299_v29, %v294_v19 }
 0x25d   :  { %v473_v44 = vadd.f32 %v472_v30, %v455_v23  ;;  %v474_v45 = vadd.f32 %v472_v30, %v459_v22  ;;  %v475_v46 = vadd.f32 %v472_v30, %v463_v32  ;;  %v476_v47 = vadd.f32 %v472_v30, %v467_v38 }
 0x25e   :  { %vm305_vm3 = vcmp.gt.f32.partialorder %v301_v40, 0.0  ;;  %v309_v48 = vmul.f32 0.2, %v301_v40  ;;  %vm304_vm4 = vcmp.gt.f32.partialorder %v300_v41, 0.0  ;;  %v308_v49 = vmul.f32 0.2, %v300_v41 }
 0x25f   :  { %vm306_vm5 = vcmp.gt.f32.partialorder %v302_v42, 0.0  ;;  %v310_v50 = vmul.f32 0.2, %v302_v42  ;;  %vm307_vm6 = vcmp.gt.f32.partialorder %v303_v43, 0.0  ;;  %v311_v51 = vmul.f32 0.2, %v303_v43 }
 0x260   :  { %v313_v52 = vsel %vm305_vm3, %v301_v40, %v309_v48  ;;  %v312_v53 = vsel %vm304_vm4, %v300_v41, %v308_v49  ;;  %vm477_vm7 = vcmp.gt.f32.partialorder %v473_v44, 0.0  ;;  %v481_v54 = vmul.f32 0.2, %v473_v44 }
 0x261   :  { %v325_v55 = vadd.f32 %v2599_v34, %v313_v52  ;;  %v324_v56 = vadd.f32 %v2601_v35, %v312_v53  ;;  %v314_v57 = vsel %vm306_vm5, %v302_v42, %v310_v50  ;;  %v315_v58 = vsel %vm307_vm6, %v303_v43, %v311_v51 }
 0x262   :  { %v326_v59 = vadd.f32 %v2603_v36, %v314_v57  ;;  %vm478_vm8 = vcmp.gt.f32.partialorder %v474_v45, 0.0  ;;  %v327_v62 = vadd.f32 %v2605_v37, %v315_v58  ;;  %v482_v63 = vmul.f32 0.2, %v474_v45 }
 0x263   :  { %v331_v60 = vsel %vm168_vm0, %v325_v55, -inf  ;;  %v328_v61 = vsel %vm168_vm0, %v324_v56, -inf  ;;  %v485_v1 = vsel %vm477_vm7, %v473_v44, %v481_v54  ;;  %v483_v2 = vmul.f32 0.2, %v475_v46 }
 0x264   :  { %332 = vmax.xlane.f32.xlu0 %v331_v60  ;;  %329 = vmax.xlane.f32.xlu1 %v328_v61  ;;  %v486_v3 = vsel %vm478_vm8, %v474_v45, %v482_v63  ;;  %vm479_vm9 = vcmp.gt.f32.partialorder %v475_v46, 0.0  ;;  %vm480_vm10 = vcmp.gt.f32.partialorder %v476_v47, 0.0  ;;  %v484_v4 = vmul.f32 0.2, %v476_v47 }
 0x265   :  { %v334_v6 = vsel %vm168_vm0, %v326_v59, -inf  ;;  %v337_v7 = vsel %vm168_vm0, %v327_v62, -inf  ;;  %v489_v8 = vadd.f32 %v2601_v35, %v485_v1  ;;  %v490_v10 = vadd.f32 %v2599_v34, %v486_v3 }
 0x266   :  { %v487_v12 = vsel %vm479_vm9, %v475_v46, %v483_v2  ;;  %v488_v13 = vsel %vm480_vm10, %v476_v47, %v484_v4 }
 0x267   :  { %v493_v14 = vsel %vm168_vm0, %v489_v8, -inf  ;;  %v496_v15 = vsel %vm168_vm0, %v490_v10, -inf  ;;  %v491_v16 = vadd.f32 %v2603_v36, %v487_v12  ;;  %v492_v17 = vadd.f32 %v2605_v37, %v488_v13  ;;  %v1982_v12 = vld [vmem:[#allocation10 + $0x10] sm:$0xff]  }
 0x268   :  { %335 = vmax.xlane.f32.xlu0 %v334_v6  ;;  %338 = vmax.xlane.f32.xlu1 %v337_v7 }
 0x269   :  { %v499_v18 = vsel %vm168_vm0, %v491_v16, -inf  ;;  %v502_v19 = vsel %vm168_vm0, %v492_v17, -inf }
 0x26c   :  { %494 = vmax.xlane.f32.xlu0 %v493_v14  ;;  %497 = vmax.xlane.f32.xlu1 %v496_v15 }
 0x270   :  { %500 = vmax.xlane.f32.xlu0 %v499_v18  ;;  %503 = vmax.xlane.f32.xlu1 %v502_v19 }
 0x281   :  { %539 = vrot.lane.b32.xlu1 %v2579_v9, %s2380_s7 }
 0x286   :  { %537 = vrot.lane.b32.xlu0 %v2581_v11, %s2380_s7 }
 0x2f1   :  { %v333_v20 = vpop.xlane.xlu0 %332  ;;  %v330_v21 = vpop.xlane.xlu1 %329 }
 0x2f2   :  { %v341_v22 = vsub.f32 %v325_v55, %v333_v20  ;;  %v340_v23 = vsub.f32 %v324_v56, %v330_v21 }
 0x2f4   :  { %v346_v26 = vmul.f32 1.442695, %v341_v22  ;;  %v344_v27 = vmul.f32 1.442695, %v340_v23 }
 0x2f5   :  { %v336_v28 = vpop.xlane.xlu0 %335  ;;  %v339_v29 = vpop.xlane.xlu1 %338 }
 0x2f6   :  { %1988 = vpow2.f32 %v346_v26  ;;  %v342_v30 = vsub.f32 %v326_v59, %v336_v28  ;;  %v343_v31 = vsub.f32 %v327_v62, %v339_v29 }
 0x2f7   :  { %1990 = vpow2.f32 %v344_v27 }
 0x2f8   :  { %v348_v32 = vmul.f32 1.442695, %v342_v30  ;;  %v350_v33 = vmul.f32 1.442695, %v343_v31 }
 0x2f9   :  { %v495_v38 = vpop.xlane.xlu0 %494  ;;  %v498_v39 = vpop.xlane.xlu1 %497 }
 0x2fa   :  { %1992 = vpow2.f32 %v348_v32  ;;  %v505_v9 = vsub.f32 %v489_v8, %v495_v38  ;;  %v506_v40 = vsub.f32 %v490_v10, %v498_v39  ;;  %v1980_v8 = vld [vmem:[#allocation10] sm:$0xff]   ;;  %v1981_v10 = vld [vmem:[#allocation10 + $0x8] sm:$0xff]  }
 0x2fb   :  { %1994 = vpow2.f32 %v350_v33  ;;  %1859 = vmatprep.subr.bf16.mxu1 %v1980_v8 }
 0x2fc   :  { %v509_v11 = vmul.f32 1.442695, %v505_v9  ;;  %v511_v41 = vmul.f32 1.442695, %v506_v40  ;;  %1860 = vmatpush3.bf16.msra.mxu1 %v1980_v8 }
 0x2fd   :  { %v501_v42 = vpop.xlane.xlu0 %500  ;;  %v504_v43 = vpop.xlane.xlu1 %503  ;;  %1861 = vmatprep.subr.bf16.mxu1 %v1981_v10 }
 0x2fe   :  { %1996 = vpow2.f32 %v509_v11  ;;  %v507_v44 = vsub.f32 %v491_v16, %v501_v42  ;;  %v508_v45 = vsub.f32 %v492_v17, %v504_v43 }
 0x2ff   :  { %1998 = vpow2.f32 %v511_v41 }
 0x300   :  { %v1989_v46 = vpop.eup %1988  ;;  %v513_v47 = vmul.f32 1.442695, %v507_v44  ;;  %v515_v48 = vmul.f32 1.442695, %v508_v45  ;;  %1862 = vmatpush3.bf16.msra.mxu1 %v1981_v10  ;;  %v1983_v45 = vld [vmem:[#allocation10 + $0x18] sm:$0xff]  }
 0x301   :  { %v1991_v49 = vpop.eup %1990  ;;  %v538_v50 = vpop.permute.xlu0 %537  ;;  %v355_v4 = vsel %vm168_vm0, %v1989_v46, 0.0  ;;  %1863 = vmatprep.subr.bf16.mxu1 %v1982_v12 }
 0x302   :  { %2000 = vpow2.f32 %v513_v47  ;;  %1851 = vmatprep.subr.bf16.mxu0 %v538_v50  ;;  %v368_v51 = vpack.c.bf16 %v1989_v46, %v1991_v49  ;;  %v540_v57 = vpop.permute.xlu1 %539  ;;  %v352_v3 = vsel %vm168_vm0, %v1991_v49, 0.0 }
 0x303   :  { %2002 = vpow2.f32 %v515_v48 }
 0x304   :  { %v1993_v52 = vpop.eup %1992  ;;  %1847 = vmatprep.mubr.msk.bf16.mxu0 %vm168_vm0, %v368_v51  ;;  %1864 = vmatpush3.bf16.msra.mxu1 %v1982_v12 }
 0x305   :  { %v1995_v53 = vpop.eup %1994  ;;  %v358_v6 = vsel %vm168_vm0, %v1993_v52, 0.0  ;;  %1865 = vmatprep.subr.bf16.mxu1 %v1983_v45 }
 0x306   :  { %v369_v54 = vpack.c.bf16 %v1995_v53, %v1993_v52  ;;  %v361_v7 = vsel %vm168_vm0, %v1995_v53, 0.0 }
 0x308   :  { %v1997_v55 = vpop.eup %1996  ;;  %1848 = vmatmul.mubr.msk.bf16.vlgmr.msra.gmra.mrb[4].mxu0 %vm168_vm0, %v369_v54  ;;  %1866 = vmatpush3.bf16.msra.mxu1 %v1983_v45 }
 0x309   :  { %v1999_v56 = vpop.eup %1998  ;;  %1852 = vmatpush3.bf16.msra.mxu0 %v538_v50  ;;  %v517_v58 = vsel %vm168_vm0, %v1997_v55, 0.0 }
 0x30a   :  { %1853 = vmatprep.subr.bf16.mxu0 %v540_v57  ;;  %518 = vadd.xlane.f32.xlu1 %v517_v58  ;;  %v520_v59 = vsel %vm168_vm0, %v1999_v56, 0.0  ;;  %v533_v60 = vpack.c.bf16 %v1999_v56, %v1997_v55 }
 0x30b   :  { %521 = vadd.xlane.f32.xlu0 %v520_v59 }
 0x30c   :  { %v2001_v61 = vpop.eup %2000  ;;  %1855 = vmatprep.mubr.msk.bf16.mxu0 %vm168_vm0, %v533_v60 }
 0x30d   :  { %v2003_v62 = vpop.eup %2002  ;;  %1854 = vmatpush3.bf16.msra.mxu0 %v540_v57  ;;  %v523_v63 = vsel %vm168_vm0, %v2001_v61, 0.0 }
 0x30e   :  { %v526_v1 = vsel %vm168_vm0, %v2003_v62, 0.0  ;;  %v534_v2 = vpack.c.bf16 %v2003_v62, %v2001_v61  ;;  %1871 = vmatprep.subr.bf16.mxu0 %v2377_v5 }
 0x30f   :  { %524 = vadd.xlane.f32.xlu0 %v523_v63  ;;  %527 = vadd.xlane.f32.xlu1 %v526_v1 }
 0x310   :  { %1856 = vmatmul.mubr.msk.bf16.vlgmr.msra.gmra.mrb[8].mxu0 %vm168_vm0, %v534_v2 }
 0x311   :  { %1875 = vmatprep.mubr.msk.bf16.mxu0 %vm2378_vm1, %v2377_v5 }
 0x313   :  { %353 = vadd.xlane.f32.xlu0 %v352_v3  ;;  %356 = vadd.xlane.f32.xlu1 %v355_v4 }
 0x317   :  { %359 = vadd.xlane.f32.xlu0 %v358_v6  ;;  %362 = vadd.xlane.f32.xlu1 %v361_v7 }
 0x397   :  { %v519_v14 = vpop.xlane.xlu1 %518 }
 0x398   :  { %v522_v13 = vpop.xlane.xlu0 %521 }
 0x39c   :  { %v525_v15 = vpop.xlane.xlu0 %524  ;;  %v528_v16 = vpop.xlane.xlu1 %527 }
 0x39d   :  { %2004 = vrcp.f32 %v525_v15 }
 0x39e   :  { %2006 = vrcp.f32 %v519_v14 }
 0x39f   :  { %2008 = vrcp.f32 %v528_v16 }
 0x3a0   :  { %2010 = vrcp.f32 %v522_v13  ;;  %v354_v60 = vpop.xlane.xlu0 %353  ;;  %v357_v61 = vpop.xlane.xlu1 %356 }
 0x3a4   :  { %v360_v62 = vpop.xlane.xlu0 %359  ;;  %v363_v63 = vpop.xlane.xlu1 %362 }
 0x3a7   :  { %v2005_v21 = vpop.eup %2004 }
 0x3a8   :  { %v2007_v23 = vpop.eup %2006 }
 0x3a9   :  { %v2009_v28 = vpop.eup %2008 }
 0x3aa   :  { %v2011_v31 = vpop.eup %2010 }
 0x3db   :  { %v2642_v17 = vpop.f32.mrb[4].mxu0 }
 0x3dc   :  { %v2644_v18 = vpop.f32.mrb[5].mxu0 }
 0x3dd   :  { %v2646_v19 = vpop.f32.mrb[6].mxu0 }
 0x3de   :  { %v2648_v20 = vpop.f32.mrb[7].mxu0 }
 0x3e3   :  { %v1857_v22 = vpop.f32.mrb[8].mxu0 }
 0x3e4   :  { %v600_v26 = vmul.f32 %v2005_v21, %v1857_v22  ;;  %v583_v27 = vpop.f32.mrb[9].mxu0 }
 0x3e5   :  { %v598_v29 = vmul.f32 %v2007_v23, %v583_v27  ;;  %v1858_v30 = vpop.f32.mrb[10].mxu0 }
 0x3e6   :  { %v608_v32 = vmin.f32 %v600_v26, 0.0  ;;  %v601_v33 = vmul.f32 %v2009_v28, %v1858_v30  ;;  %v586_v38 = vpop.f32.mrb[11].mxu0  ;;  %vm604_vm11 = vcmp.gt.f32.partialorder %v600_v26, 0.0 }
 0x3e7   :  { %v606_v39 = vmin.f32 %v598_v29, 0.0  ;;  %v599_v9 = vmul.f32 %v2011_v31, %v586_v38  ;;  %vm602_vm13 = vcmp.gt.f32.partialorder %v598_v29, 0.0 }
 0x3e8   :  { %v614_v40 = vmul.f32 1.442695, %v608_v32  ;;  %v609_v11 = vmin.f32 %v601_v33, 0.0  ;;  %vm605_vm12 = vcmp.gt.f32.partialorder %v601_v33, 0.0 }
 0x3e9   :  { %v610_v41 = vmul.f32 1.442695, %v606_v39  ;;  %v607_v42 = vmin.f32 %v599_v9, 0.0  ;;  %vm603_vm14 = vcmp.gt.f32.partialorder %v599_v9, 0.0 }
 0x3ea   :  { %2012 = vpow2.f32 %v614_v40  ;;  %v616_v43 = vmul.f32 1.442695, %v609_v11 }
 0x3eb   :  { %2014 = vpow2.f32 %v610_v41  ;;  %v612_v44 = vmul.f32 1.442695, %v607_v42 }
 0x3ec   :  { %2016 = vpow2.f32 %v616_v43 }
 0x3ed   :  { %2018 = vpow2.f32 %v612_v44 }
 0x3ee   :  { %2020 = vrcp.f32 %v360_v62 }
 0x3ef   :  { %2022 = vrcp.f32 %v354_v60 }
 0x3f0   :  { %2024 = vrcp.f32 %v363_v63 }
 0x3f1   :  { %2026 = vrcp.f32 %v357_v61 }
 0x3f4   :  { %v2013_v46 = vpop.eup %2012 }
 0x3f5   :  { %v2015_v47 = vpop.eup %2014  ;;  %v1728_v48 = vadd.f32 -1.0, %v2013_v46 }
 0x3f6   :  { %v2017_v49 = vpop.eup %2016  ;;  %v1726_v50 = vadd.f32 -1.0, %v2015_v47 }
 0x3f7   :  { %v2019_v51 = vpop.eup %2018  ;;  %v1729_v52 = vadd.f32 -1.0, %v2017_v49  ;;  %v624_v54 = vsel %vm604_vm11, %v600_v26, %v1728_v48 }
 0x3f8   :  { %v1727_v53 = vadd.f32 -1.0, %v2019_v51  ;;  %v622_v57 = vsel %vm602_vm13, %v598_v29, %v1726_v50  ;;  %v2021_v1 = vpop.eup %2020 }
 0x3f9   :  { %v625_v55 = vsel %vm605_vm12, %v601_v33, %v1729_v52  ;;  %v2023_v2 = vpop.eup %2022  ;;  %v427_v3 = vmul.f32 %v2021_v1, %v2642_v17 }
 0x3fa   :  { %v1963_v56 = vpack.i.bf16 %v625_v55, %v624_v54  ;;  %v623_v58 = vsel %vm603_vm14, %v599_v9, %v1727_v53  ;;  %v2025_v4 = vpop.eup %2024  ;;  %v425_v6 = vmul.f32 %v2023_v2, %v2644_v18 }
 0x3fb   :  { %v1958_v59 = vpack.i.bf16 %v623_v58, %v622_v57  ;;  %v2027_v7 = vpop.eup %2026  ;;  %v428_v8 = vmul.f32 %v2025_v4, %v2646_v19  ;;  %v435_v12 = vmin.f32 %v427_v3, 0.0  ;;  %vm431_vm15 = vcmp.gt.f32.partialorder %v427_v3, 0.0 }
 0x3fc   :  { %1964 = vrot.lane.b32.xlu1 %v1963_v56, %s2381_s22  ;;  %v426_v10 = vmul.f32 %v2027_v7, %v2648_v20  ;;  %v433_v13 = vmin.f32 %v425_v6, 0.0  ;;  %vm429_vm3 = vcmp.gt.f32.partialorder %v425_v6, 0.0  ;;  %v656_v56 = vld [vmem:[#allocation11] sm:$0x1] }
 0x3fd   :  { %1959 = vrot.lane.b32.xlu0 %v1958_v59, %s2381_s22  ;;  %v436_v14 = vmin.f32 %v428_v8, 0.0  ;;  %v441_v16 = vmul.f32 1.442695, %v435_v12  ;;  %vm432_vm4 = vcmp.gt.f32.partialorder %v428_v8, 0.0 }
 0x3fe   :  { %v434_v15 = vmin.f32 %v426_v10, 0.0  ;;  %v437_v21 = vmul.f32 1.442695, %v433_v13  ;;  %vm430_vm5 = vcmp.gt.f32.partialorder %v426_v10, 0.0 }
 0x3ff   :  { %v443_v22 = vmul.f32 1.442695, %v436_v14  ;;  %2028 = vpow2.f32 %v441_v16 }
 0x400   :  { %v439_v23 = vmul.f32 1.442695, %v434_v15  ;;  %2030 = vpow2.f32 %v437_v21 }
 0x401   :  { %2032 = vpow2.f32 %v443_v22 }
 0x402   :  { %2034 = vpow2.f32 %v439_v23 }
 0x409   :  { %v2029_v17 = vpop.eup %2028 }
 0x40a   :  { %v2031_v26 = vpop.eup %2030  ;;  %v1722_v28 = vadd.f32 -1.0, %v2029_v17 }
 0x40b   :  { %v2033_v18 = vpop.eup %2032  ;;  %v1720_v29 = vadd.f32 -1.0, %v2031_v26 }
 0x40c   :  { %v2035_v27 = vpop.eup %2034  ;;  %v1723_v19 = vadd.f32 -1.0, %v2033_v18  ;;  %v451_v38 = vsel %vm431_vm15, %v427_v3, %v1722_v28 }
 0x40d   :  { %v1721_v20 = vadd.f32 -1.0, %v2035_v27  ;;  %v449_v11 = vsel %vm429_vm3, %v425_v6, %v1720_v29 }
 0x40e   :  { %v452_v39 = vsel %vm432_vm4, %v428_v8, %v1723_v19 }
 0x40f   :  { %v450_v41 = vsel %vm430_vm5, %v426_v10, %v1721_v20 }
 0x46e   :  { %v1965_v30 = vpop.permute.xlu1 %1964 }
 0x46f   :  { %v1967_v31 = vunpack.i.h.bf16 %v1965_v30  ;;  %v1966_v32 = vunpack.i.l.bf16 %v1965_v30  ;;  %v1960_v33 = vpop.permute.xlu0 %1959 }
 0x470   :  { %v1962_v9 = vunpack.i.h.bf16 %v1960_v33  ;;  %v1961_v40 = vunpack.i.l.bf16 %v1960_v33 }
 0x471   :  { %v645_v42 = vsel %vm168_vm0, %v452_v39, %v1967_v31  ;;  %v644_v43 = vsel %vm168_vm0, %v451_v38, %v1966_v32 }
 0x472   :  { %v647_v44 = vpack.c.bf16 %v645_v42, %v644_v43  ;;  %v642_v45 = vsel %vm168_vm0, %v449_v11, %v1961_v40  ;;  %v643_v46 = vsel %vm168_vm0, %v450_v41, %v1962_v9 }
 0x473   :  { %v646_v47 = vpack.c.bf16 %v643_v46, %v642_v45 }
 0x475   :  { %1867 = vmatprep.mubr.msk.bf16.mxu1 %vm226_vm2, %v646_v47 }
 0x476   :  { %1868 = vmatmul.mubr.msk.bf16.vlgmr.msra.gmra.mrb[4].mxu1 %vm226_vm2, %v647_v44 }
 0x549   :  { %v1869_v48 = vpop.f32.mrb[4].mxu1 }
 0x54a   :  { %v721_v49 = vpop.f32.mrb[5].mxu1 }
 0x54b   :  { %957 = vperm.xlu1 %1957, %v721_v49   ;;  %v1870_v50 = vpop.f32.mrb[6].mxu1 }
 0x54c   :  { %v737_v51 = vpack.c.bf16 %v1870_v50, %v1869_v48  ;;  %v724_v52 = vpop.f32.mrb[7].mxu1 }
 0x54d   :  { %v736_v53 = vpack.c.bf16 %v724_v52, %v721_v49  ;;  %961 = vperm.xlu0 %1956, %v724_v52  }
 0x54e   :  { %v745_v55 = vsel %vm226_vm2, %v737_v51, 0 }
 0x54f   :  { %965 = vperm.xlu1 %1957, %v1869_v48   ;;  %1879 = vmatprep.subr.bf16.mxu1 %v736_v53  ;;  %v742_v54 = vsel %vm226_vm2, %v736_v53, 0 }
 0x550   :  { %1872 = vmatpush3.bf16.xpose.msra.mxu0 %v742_v54  ;;  %1880 = vmatpush3.bf16.msra.mxu1 %v736_v53 }
 0x551   :  { %969 = vperm.xlu0 %1956, %v1870_v50   ;;  %1881 = vmatprep.subr.bf16.mxu1 %v737_v51 }
 0x552   :  { %1873 = vmatprep.subr.bf16.mxu0 %v2377_v5 }
 0x553   :  { %1968 = vset.pattern.permute.xlu1 %v2376_v0 }
 0x554   :  { %789 = vperm.xlu1 %1968, %v721_v49   ;;  %1882 = vmatpush3.bf16.msra.mxu1 %v737_v51 }
 0x555   :  { %1969 = vset.pattern.permute.xlu0 %v2376_v0 }
 0x556   :  { %794 = vperm.xlu0 %1969, %v724_v52  }
 0x558   :  { %799 = vperm.xlu1 %1968, %v1869_v48   ;;  %1874 = vmatpush3.bf16.xpose.msra.mxu0 %v745_v55 }
 0x55c   :  { %804 = vperm.xlu1 %1968, %v1870_v50  }
 0x55f   :  { %1876 = vmatmul.mubr.msk.bf16.vlgmr.msra.gmra.mrb[12].mxu0 %vm226_vm2, %v656_v56 }
 0x5ca   :  { %v958_v57 = vpop.permute.xlu1 %957 }
 0x5cc   :  { %v962_v58 = vpop.permute.xlu0 %961 }
 0x5ce   :  { %v966_v60 = vpop.permute.xlu1 %965 }
 0x5d0   :  { %v970_v63 = vpop.permute.xlu0 %969 }
 0x5d3   :  { %v790_v29 = vpop.permute.xlu1 %789 }
 0x5d5   :  { %v795_v33 = vpop.permute.xlu0 %794 }
 0x5d7   :  { %v800_v30 = vpop.permute.xlu1 %799 }
 0x5db   :  { %v805_v40 = vpop.permute.xlu1 %804 }
 0x632   :  { %v781_v59 = vpop.f32.mrb[12].mxu0 }
 0x633   :  { %v975_v61 = vrot.slane %v781_v59, %v2595_v25  ;;  %v1877_v62 = vpop.f32.mrb[13].mxu0  ;;  %v810_v19 = vrot.slane %v781_v59, %v2593_v24 }
 0x634   :  { %v784_v1 = vpop.f32.mrb[14].mxu0 }
 0x635   :  { %v1878_v2 = vpop.f32.mrb[15].mxu0  ;;  %v977_v0 = vadd.f32 %v975_v61, %v962_v58  ;;  %v976_v3 = vadd.f32 %v975_v61, %v958_v57  ;;  %v978_v4 = vadd.f32 %v975_v61, %v966_v60  ;;  %v979_v6 = vadd.f32 %v975_v61, %v970_v63 }
 0x636   :  { %v811_v20 = vadd.f32 %v810_v19, %v790_v29  ;;  %v813_v32 = vadd.f32 %v810_v19, %v800_v30  ;;  %v812_v9 = vadd.f32 %v810_v19, %v795_v33  ;;  %v814_v43 = vadd.f32 %v810_v19, %v805_v40  ;;  %v1984_v40 = vld [vmem:[#allocation13] sm:$0xff]  }
 0x637   :  { %vm981_vm6 = vcmp.gt.f32.partialorder %v977_v0, 0.0  ;;  %v985_v7 = vmul.f32 0.2, %v977_v0  ;;  %vm980_vm7 = vcmp.gt.f32.partialorder %v976_v3, 0.0  ;;  %v984_v8 = vmul.f32 0.2, %v976_v3  ;;  %1895 = vmatprep.subr.bf16.mxu1 %v1984_v40 }
 0x638   :  { %vm982_vm8 = vcmp.gt.f32.partialorder %v978_v4, 0.0  ;;  %v986_v10 = vmul.f32 0.2, %v978_v4  ;;  %v987_v14 = vmul.f32 0.2, %v979_v6  ;;  %vm983_vm9 = vcmp.gt.f32.partialorder %v979_v6, 0.0 }
 0x639   :  { %v989_v12 = vsel %vm981_vm6, %v977_v0, %v985_v7  ;;  %v988_v13 = vsel %vm980_vm7, %v976_v3, %v984_v8  ;;  %v819_v31 = vmul.f32 0.2, %v811_v20  ;;  %vm815_vm10 = vcmp.gt.f32.partialorder %v811_v20, 0.0 }
 0x63a   :  { %v993_v15 = vadd.f32 %v2599_v34, %v989_v12  ;;  %v992_v16 = vadd.f32 %v2601_v35, %v988_v13  ;;  %v990_v21 = vsel %vm982_vm8, %v978_v4, %v986_v10  ;;  %v991_v26 = vsel %vm983_vm9, %v979_v6, %v987_v14 }
 0x63b   :  { %v994_v17 = vadd.f32 %v2603_v36, %v990_v21  ;;  %v995_v27 = vadd.f32 %v2605_v37, %v991_v26  ;;  %v823_v38 = vsel %vm815_vm10, %v811_v20, %v819_v31  ;;  %v821_v39 = vmul.f32 0.2, %v813_v32 }
 0x63c   :  { %v999_v22 = vsel %vm168_vm0, %v993_v15, -inf  ;;  %v996_v23 = vsel %vm168_vm0, %v992_v16, -inf  ;;  %vm817_vm11 = vcmp.gt.f32.partialorder %v813_v32, 0.0  ;;  %v827_v11 = vadd.f32 %v2601_v35, %v823_v38 }
 0x63d   :  { %1000 = vmax.xlane.f32.xlu1 %v999_v22  ;;  %997 = vmax.xlane.f32.xlu0 %v996_v23  ;;  %v1002_v18 = vsel %vm168_vm0, %v994_v17, -inf  ;;  %v1005_v28 = vsel %vm168_vm0, %v995_v27, -inf  ;;  %v825_v41 = vsel %vm817_vm11, %v813_v32, %v821_v39  ;;  %v820_v42 = vmul.f32 0.2, %v812_v9 }
 0x63e   :  { %vm816_vm12 = vcmp.gt.f32.partialorder %v812_v9, 0.0  ;;  %v831_v44 = vsel %vm168_vm0, %v827_v11, -inf  ;;  %v829_v45 = vadd.f32 %v2603_v36, %v825_v41  ;;  %v822_v47 = vmul.f32 0.2, %v814_v43 }
 0x63f   :  { %v824_v46 = vsel %vm816_vm12, %v812_v9, %v820_v42  ;;  %vm818_vm13 = vcmp.gt.f32.partialorder %v814_v43, 0.0  ;;  %vm1249_vm8 = vcmask 130048  }
 0x640   :  { %v837_v48 = vsel %vm168_vm0, %v829_v45, -inf  ;;  %v828_v49 = vadd.f32 %v2599_v34, %v824_v46  ;;  %v826_v50 = vsel %vm818_vm13, %v814_v43, %v822_v47 }
 0x641   :  { %1003 = vmax.xlane.f32.xlu0 %v1002_v18 }
 0x642   :  { %v834_v35 = vsel %vm168_vm0, %v828_v49, -inf }
 0x645   :  { %1006 = vmax.xlane.f32.xlu0 %v1005_v28 }
 0x64e   :  { %1040 = vrot.lane.b32.xlu1 %v736_v53, %s2380_s7 }
 0x65b   :  { %1042 = vrot.lane.b32.xlu0 %v737_v51, %s2380_s7  ;;  %v830_v51 = vadd.f32 %v2605_v37, %v826_v50 }
 0x65d   :  { %v840_v52 = vsel %vm168_vm0, %v830_v51, -inf }
 0x672   :  { %832 = vmax.xlane.f32.xlu1 %v831_v44 }
 0x676   :  { %838 = vmax.xlane.f32.xlu1 %v837_v48 }
 0x67a   :  { %835 = vmax.xlane.f32.xlu0 %v834_v35 }
 0x67e   :  { %841 = vmax.xlane.f32.xlu0 %v840_v52 }
 0x6ca   :  { %v1001_v53 = vpop.xlane.xlu1 %1000  ;;  %v998_v36 = vpop.xlane.xlu0 %997 }
 0x6cb   :  { %v1009_v54 = vsub.f32 %v993_v15, %v1001_v53  ;;  %v1008_v55 = vsub.f32 %v992_v16, %v998_v36 }
 0x6cd   :  { %v1014_v56 = vmul.f32 1.442695, %v1009_v54  ;;  %v1012_v57 = vmul.f32 1.442695, %v1008_v55 }
 0x6ce   :  { %v1041_v58 = vpop.permute.xlu1 %1040  ;;  %v1004_v59 = vpop.xlane.xlu0 %1003 }
 0x6cf   :  { %2036 = vpow2.f32 %v1014_v56  ;;  %v1010_v34 = vsub.f32 %v994_v17, %v1004_v59  ;;  %1887 = vmatprep.subr.bf16.mxu0 %v1041_v58 }
 0x6d0   :  { %2038 = vpow2.f32 %v1012_v57  ;;  %1888 = vmatpush3.bf16.msra.mxu0 %v1041_v58 }
 0x6d1   :  { %v1016_v60 = vmul.f32 1.442695, %v1010_v34 }
 0x6d2   :  { %v1007_v61 = vpop.xlane.xlu0 %1006 }
 0x6d3   :  { %2040 = vpow2.f32 %v1016_v60  ;;  %v1011_v37 = vsub.f32 %v995_v27, %v1007_v61 }
 0x6d5   :  { %v1018_v62 = vmul.f32 1.442695, %v1011_v37  ;;  %v1986_v37 = vld [vmem:[#allocation13 + $0x10] sm:$0xff]  }
 0x6d6   :  { %v1043_v63 = vpop.permute.xlu0 %1042 }
 0x6d7   :  { %2042 = vpow2.f32 %v1018_v62  ;;  %1889 = vmatprep.subr.bf16.mxu0 %v1043_v63  ;;  %v1987_v62 = vld [vmem:[#allocation13 + $0x18] sm:$0xff]  }
 0x6d8   :  { %1890 = vmatpush3.bf16.msra.mxu0 %v1043_v63 }
 0x6d9   :  { %v2037_v1 = vpop.eup %2036  ;;  %1907 = vmatprep.subr.bf16.mxu0 %v2377_v5 }
 0x6da   :  { %v2039_v2 = vpop.eup %2038  ;;  %v1023_v0 = vsel %vm168_vm0, %v2037_v1, 0.0 }
 0x6db   :  { %1024 = vadd.xlane.f32.xlu0 %v1023_v0  ;;  %v1020_v3 = vsel %vm168_vm0, %v2039_v2, 0.0  ;;  %v1036_v4 = vpack.c.bf16 %v2037_v1, %v2039_v2 }
 0x6dc   :  { %1021 = vadd.xlane.f32.xlu1 %v1020_v3 }
 0x6dd   :  { %v2041_v6 = vpop.eup %2040  ;;  %1891 = vmatprep.mubr.msk.bf16.mxu0 %vm168_vm0, %v1036_v4 }
 0x6de   :  { %v1026_v7 = vsel %vm168_vm0, %v2041_v6, 0.0 }
 0x6e0   :  { %1027 = vadd.xlane.f32.xlu1 %v1026_v7  ;;  %v2382_v7 = vmov 16  }
 0x6e1   :  { %v2043_v8 = vpop.eup %2042  ;;  %1970 = vset.pattern.permute.xlu1 %v2382_v7  ;;  %1971 = vset.pattern.permute.xlu0 %v2382_v7 }
 0x6e2   :  { %v1029_v10 = vsel %vm168_vm0, %v2043_v8, 0.0  ;;  %v1037_v12 = vpack.c.bf16 %v2043_v8, %v2041_v6 }
 0x6e3   :  { %1030 = vadd.xlane.f32.xlu0 %v1029_v10 }
 0x6e4   :  { %1892 = vmatmul.mubr.msk.bf16.vlgmr.msra.gmra.mrb[16].mxu0 %vm168_vm0, %v1037_v12 }
 0x6e5   :  { %1911 = vmatprep.mubr.msk.bf16.mxu0 %vm2378_vm1, %v2377_v5 }
 0x6ff   :  { %v833_v13 = vpop.xlane.xlu1 %832 }
 0x700   :  { %v843_v14 = vsub.f32 %v827_v11, %v833_v13  ;;  %v1985_v11 = vld [vmem:[#allocation13 + $0x8] sm:$0xff]  }
 0x702   :  { %v847_v15 = vmul.f32 1.442695, %v843_v14 }
 0x703   :  { %v839_v16 = vpop.xlane.xlu1 %838 }
 0x704   :  { %2044 = vpow2.f32 %v847_v15  ;;  %v845_v21 = vsub.f32 %v829_v45, %v839_v16 }
 0x706   :  { %v851_v22 = vmul.f32 1.442695, %v845_v21 }
 0x707   :  { %v836_v23 = vpop.xlane.xlu0 %835 }
 0x708   :  { %2046 = vpow2.f32 %v851_v22  ;;  %v844_v17 = vsub.f32 %v828_v49, %v836_v23 }
 0x70a   :  { %v849_v26 = vmul.f32 1.442695, %v844_v17 }
 0x70b   :  { %v842_v18 = vpop.xlane.xlu0 %841 }
 0x70c   :  { %2048 = vpow2.f32 %v849_v26  ;;  %v846_v27 = vsub.f32 %v830_v51, %v842_v18 }
 0x70e   :  { %v2045_v28 = vpop.eup %2044  ;;  %v853_v19 = vmul.f32 1.442695, %v846_v27 }
 0x70f   :  { %v855_v29 = vsel %vm168_vm0, %v2045_v28, 0.0 }
 0x710   :  { %2050 = vpow2.f32 %v853_v19  ;;  %856 = vadd.xlane.f32.xlu1 %v855_v29 }
 0x712   :  { %v2047_v20 = vpop.eup %2046 }
 0x713   :  { %v861_v30 = vsel %vm168_vm0, %v2047_v20, 0.0 }
 0x714   :  { %862 = vadd.xlane.f32.xlu1 %v861_v30 }
 0x716   :  { %v2049_v31 = vpop.eup %2048 }
 0x717   :  { %v858_v32 = vsel %vm168_vm0, %v2049_v31, 0.0  ;;  %v871_v33 = vpack.c.bf16 %v2049_v31, %v2045_v28 }
 0x718   :  { %859 = vadd.xlane.f32.xlu0 %v858_v32 }
 0x719   :  { %1883 = vmatprep.mubr.msk.bf16.mxu1 %vm168_vm0, %v871_v33 }
 0x71a   :  { %v2051_v38 = vpop.eup %2050 }
 0x71b   :  { %v864_v39 = vsel %vm168_vm0, %v2051_v38, 0.0  ;;  %v872_v9 = vpack.c.bf16 %v2051_v38, %v2047_v20 }
 0x71c   :  { %865 = vadd.xlane.f32.xlu0 %v864_v39 }
 0x71d   :  { %1884 = vmatmul.mubr.msk.bf16.vlgmr.msra.gmra.mrb[8].mxu1 %vm168_vm0, %v872_v9 }
 0x71e   :  { %1896 = vmatpush3.bf16.msra.mxu1 %v1984_v40 }
 0x71f   :  { %1897 = vmatprep.subr.bf16.mxu1 %v1985_v11 }
 0x722   :  { %1898 = vmatpush3.bf16.msra.mxu1 %v1985_v11 }
 0x723   :  { %1899 = vmatprep.subr.bf16.mxu1 %v1986_v37 }
 0x726   :  { %1900 = vmatpush3.bf16.msra.mxu1 %v1986_v37 }
 0x727   :  { %1901 = vmatprep.subr.bf16.mxu1 %v1987_v62 }
 0x72a   :  { %1902 = vmatpush3.bf16.msra.mxu1 %v1987_v62 }
 0x768   :  { %v1025_v42 = vpop.xlane.xlu0 %1024 }
 0x769   :  { %v1022_v41 = vpop.xlane.xlu1 %1021 }
 0x76d   :  { %v1028_v43 = vpop.xlane.xlu1 %1027 }
 0x76e   :  { %2052 = vrcp.f32 %v1028_v43 }
 0x76f   :  { %2054 = vrcp.f32 %v1022_v41 }
 0x770   :  { %v1031_v44 = vpop.xlane.xlu0 %1030 }
 0x771   :  { %2056 = vrcp.f32 %v1031_v44 }
 0x772   :  { %2058 = vrcp.f32 %v1025_v42 }
 0x778   :  { %v2053_v45 = vpop.eup %2052 }
 0x779   :  { %v2055_v47 = vpop.eup %2054 }
 0x77b   :  { %v2057_v50 = vpop.eup %2056 }
 0x77c   :  { %v2059_v52 = vpop.eup %2058 }
 0x79d   :  { %v857_v23 = vpop.xlane.xlu1 %856 }
 0x7a1   :  { %v863_v26 = vpop.xlane.xlu1 %862 }
 0x7a5   :  { %v860_v17 = vpop.xlane.xlu0 %859 }
 0x7a9   :  { %v866_v18 = vpop.xlane.xlu0 %865 }
 0x7b7   :  { %v1893_v46 = vpop.f32.mrb[16].mxu0 }
 0x7b8   :  { %v1103_v48 = vmul.f32 %v2053_v45, %v1893_v46  ;;  %v1086_v49 = vpop.f32.mrb[17].mxu0 }
 0x7b9   :  { %v1101_v35 = vmul.f32 %v2055_v47, %v1086_v49  ;;  %v1894_v51 = vpop.f32.mrb[18].mxu0 }
 0x7ba   :  { %v1111_v53 = vmin.f32 %v1103_v48, 0.0  ;;  %v1104_v36 = vmul.f32 %v2057_v50, %v1894_v51  ;;  %v1089_v54 = vpop.f32.mrb[19].mxu0  ;;  %vm1107_vm15 = vcmp.gt.f32.partialorder %v1103_v48, 0.0 }
 0x7bb   :  { %v1109_v55 = vmin.f32 %v1101_v35, 0.0  ;;  %v1102_v56 = vmul.f32 %v2059_v52, %v1089_v54  ;;  %vm1105_vm1 = vcmp.gt.f32.partialorder %v1101_v35, 0.0 }
 0x7bc   :  { %v1117_v57 = vmul.f32 1.442695, %v1111_v53  ;;  %v1112_v58 = vmin.f32 %v1104_v36, 0.0  ;;  %vm1108_vm3 = vcmp.gt.f32.partialorder %v1104_v36, 0.0 }
 0x7bd   :  { %v1113_v59 = vmul.f32 1.442695, %v1109_v55  ;;  %v1110_v34 = vmin.f32 %v1102_v56, 0.0  ;;  %vm1106_vm14 = vcmp.gt.f32.partialorder %v1102_v56, 0.0 }
 0x7be   :  { %2060 = vpow2.f32 %v1117_v57  ;;  %v1119_v60 = vmul.f32 1.442695, %v1112_v58 }
 0x7bf   :  { %2062 = vpow2.f32 %v1113_v59  ;;  %v1115_v61 = vmul.f32 1.442695, %v1110_v34 }
 0x7c1   :  { %2064 = vpow2.f32 %v1115_v61 }
 0x7c2   :  { %2066 = vpow2.f32 %v1119_v60 }
 0x7c3   :  { %2068 = vrcp.f32 %v857_v23 }
 0x7c4   :  { %2070 = vrcp.f32 %v860_v17 }
 0x7c5   :  { %2072 = vrcp.f32 %v863_v26 }
 0x7c6   :  { %2074 = vrcp.f32 %v866_v18 }
 0x7c8   :  { %v2061_v63 = vpop.eup %2060 }
 0x7c9   :  { %v2063_v1 = vpop.eup %2062  ;;  %v1747_v6 = vadd.f32 -1.0, %v2061_v63 }
 0x7ca   :  { %v1745_v2 = vadd.f32 -1.0, %v2063_v1 }
 0x7cb   :  { %v2065_v0 = vpop.eup %2064  ;;  %v1127_v12 = vsel %vm1107_vm15, %v1103_v48, %v1747_v6 }
 0x7cc   :  { %v1125_v3 = vsel %vm1105_vm1, %v1101_v35, %v1745_v2  ;;  %v1746_v4 = vadd.f32 -1.0, %v2065_v0  ;;  %v2067_v8 = vpop.eup %2066 }
 0x7cd   :  { %1133 = vrot.lane.b32.xlu1 %v1125_v3, %s2381_s22  ;;  %v1748_v13 = vadd.f32 -1.0, %v2067_v8  ;;  %v2069_v27 = vpop.eup %2068 }
 0x7ce   :  { %v1126_v10 = vsel %vm1106_vm14, %v1102_v56, %v1746_v4  ;;  %v2071_v19 = vpop.eup %2070 }
 0x7cf   :  { %1135 = vrot.lane.b32.xlu0 %v1126_v10, %s2381_s22  ;;  %v1128_v14 = vsel %vm1108_vm3, %v1104_v36, %v1748_v13  ;;  %v2073_v20 = vpop.eup %2072  ;;  %v2383_v10 = vmov 17  }
 0x7d0   :  { %v2075_v33 = vpop.eup %2074 }
 0x7d1   :  { %1137 = vrot.lane.b32.xlu1 %v1127_v12, %s2381_s22 }
 0x7d5   :  { %1139 = vrot.lane.b32.xlu1 %v1128_v14, %s2381_s22  ;;  %v1167_v14 = vld [vmem:[#allocation14] sm:$0x1] }
 0x7f0   :  { %v1885_v15 = vpop.f32.mrb[8].mxu1 }
 0x7f1   :  { %v913_v16 = vpop.f32.mrb[9].mxu1  ;;  %v930_v30 = vmul.f32 %v2073_v20, %v1885_v15 }
 0x7f2   :  { %v1886_v21 = vpop.f32.mrb[10].mxu1  ;;  %v928_v28 = vmul.f32 %v2069_v27, %v913_v16  ;;  %v2736_v27 = vld [vmem:[#allocation5 + $0x8] sm:$0xff]  }
 0x7f3   :  { %v916_v22 = vpop.f32.mrb[11].mxu1  ;;  %v938_v38 = vmin.f32 %v930_v30, 0.0  ;;  %v931_v9 = vmul.f32 %v2075_v33, %v1886_v21  ;;  %vm934_vm6 = vcmp.gt.f32.partialorder %v930_v30, 0.0 }
 0x7f4   :  { %v929_v29 = vmul.f32 %v2071_v19, %v916_v22  ;;  %v936_v31 = vmin.f32 %v928_v28, 0.0  ;;  %vm932_vm4 = vcmp.gt.f32.partialorder %v928_v28, 0.0 }
 0x7f5   :  { %v944_v11 = vmul.f32 1.442695, %v938_v38  ;;  %v939_v41 = vmin.f32 %v931_v9, 0.0  ;;  %vm935_vm7 = vcmp.gt.f32.partialorder %v931_v9, 0.0 }
 0x7f6   :  { %v937_v32 = vmin.f32 %v929_v29, 0.0  ;;  %v940_v39 = vmul.f32 1.442695, %v936_v31  ;;  %vm933_vm5 = vcmp.gt.f32.partialorder %v929_v29, 0.0 }
 0x7f7   :  { %v946_v42 = vmul.f32 1.442695, %v939_v41 }
 0x7f8   :  { %v942_v40 = vmul.f32 1.442695, %v937_v32  ;;  %2076 = vpow2.f32 %v940_v39 }
 0x7fa   :  { %2078 = vpow2.f32 %v942_v40 }
 0x7fb   :  { %2080 = vpow2.f32 %v944_v11 }
 0x7fc   :  { %2082 = vpow2.f32 %v946_v42 }
 0x802   :  { %v2077_v43 = vpop.eup %2076 }
 0x803   :  { %v1739_v45 = vadd.f32 -1.0, %v2077_v43 }
 0x804   :  { %v2079_v44 = vpop.eup %2078 }
 0x805   :  { %v2081_v46 = vpop.eup %2080  ;;  %v1740_v47 = vadd.f32 -1.0, %v2079_v44  ;;  %v952_v48 = vsel %vm932_vm4, %v928_v28, %v1739_v45 }
 0x806   :  { %v1741_v50 = vadd.f32 -1.0, %v2081_v46  ;;  %v2083_v35 = vpop.eup %2082 }
 0x807   :  { %v953_v53 = vsel %vm933_vm5, %v929_v29, %v1740_v47  ;;  %v1742_v59 = vadd.f32 -1.0, %v2083_v35 }
 0x808   :  { %v954_v57 = vsel %vm934_vm6, %v930_v30, %v1741_v50 }
 0x809   :  { %v955_v61 = vsel %vm935_vm7, %v931_v9, %v1742_v59  ;;  %v1774_v9 = vunpack.c.l.bf16 %v2736_v27  ;;  %v1775_v59 = vunpack.c.h.bf16 %v2736_v27 }
 0x83f   :  { %v1134_v49 = vpop.permute.xlu1 %1133 }
 0x840   :  { %v1145_v51 = vsel %vm168_vm0, %v952_v48, %v1134_v49 }
 0x841   :  { %v1149_v52 = vsel %vm226_vm2, %v1145_v51, 0.0  ;;  %v1136_v36 = vpop.permute.xlu0 %1135 }
 0x842   :  { %1153 = vst [vmem:[#allocation16] sm:$0xff] %v1149_v52  ;;  %v1146_v54 = vsel %vm168_vm0, %v953_v53, %v1136_v36 }
 0x843   :  { %v1150_v55 = vsel %vm226_vm2, %v1146_v54, 0.0  ;;  %v1157_v56 = vpack.c.bf16 %v1146_v54, %v1145_v51  ;;  %v1138_v58 = vpop.permute.xlu1 %1137 }
 0x844   :  { %1154 = vst [vmem:[#allocation16 + $0x8] sm:$0xff] %v1150_v55  ;;  %v1147_v34 = vsel %vm168_vm0, %v954_v57, %v1138_v58 }
 0x845   :  { %v1151_v60 = vsel %vm226_vm2, %v1147_v34, 0.0  ;;  %1903 = vmatprep.mubr.msk.bf16.mxu1 %vm226_vm2, %v1157_v56 }
 0x846   :  { %1155 = vst [vmem:[#allocation16 + $0x10] sm:$0xff] %v1151_v60 }
 0x847   :  { %v1140_v37 = vpop.permute.xlu1 %1139 }
 0x848   :  { %v1148_v62 = vsel %vm168_vm0, %v955_v61, %v1140_v37 }
 0x849   :  { %v1152_v63 = vsel %vm226_vm2, %v1148_v62, 0.0  ;;  %v1158_v1 = vpack.c.bf16 %v1148_v62, %v1147_v34 }
 0x84a   :  { %1156 = vst [vmem:[#allocation16 + $0x18] sm:$0xff] %v1152_v63 }
 0x84b   :  { %1904 = vmatmul.mubr.msk.bf16.vlgmr.msra.gmra.mrb[12].mxu1 %vm226_vm2, %v1158_v1 }
 0x91e   :  { %v1905_v2 = vpop.f32.mrb[12].mxu1 }
 0x91f   :  { %1311 = vperm.xlu1 %1970, %v1905_v2   ;;  %v1232_v0 = vpop.f32.mrb[13].mxu1 }
 0x920   :  { %1301 = vperm.xlu0 %1971, %v1232_v0   ;;  %v1906_v3 = vpop.f32.mrb[14].mxu1 }
 0x921   :  { %v2719_v4 = vpack.c.bf16 %v1906_v3, %v1905_v2  ;;  %v1235_v6 = vpop.f32.mrb[15].mxu1 }
 0x922   :  { %v2721_v8 = vpack.c.bf16 %v1235_v6, %v1232_v0 }
 0x923   :  { %1972 = vset.pattern.permute.xlu1 %v2383_v10  ;;  %v1257_v13 = vsel %vm1249_vm8, %v2719_v4, 0 }
 0x924   :  { %1453 = vperm.xlu1 %1972, %v1232_v0   ;;  %1974 = vset.pattern.permute.xlu0 %v2383_v10  ;;  %v1254_v12 = vsel %vm1249_vm8, %v2721_v8, 0 }
 0x925   :  { %1915 = vmatprep.subr.bf16.mxu1 %v2721_v8  ;;  %1457 = vperm.xlu0 %1974, %v1235_v6  }
 0x926   :  { %1908 = vmatpush3.bf16.xpose.msra.mxu0 %v1254_v12  ;;  %1916 = vmatpush3.bf16.msra.mxu1 %v2721_v8 }
 0x927   :  { %1917 = vmatprep.subr.bf16.mxu1 %v2719_v4  ;;  %1909 = vmatprep.subr.bf16.mxu0 %v2377_v5 }
 0x928   :  { %1973 = vset.pattern.permute.xlu1 %v2382_v7  ;;  %v1769_v7 = vld [vmem:[#allocation5] sm:$0xff]  }
 0x929   :  { %1316 = vperm.xlu1 %1973, %v1906_v3   ;;  %1461 = vperm.xlu0 %1974, %v1905_v2   ;;  %v1771_v29 = vunpack.c.h.bf16 %v1769_v7  ;;  %v1770_v20 = vunpack.c.l.bf16 %v1769_v7 }
 0x92a   :  { %1918 = vmatpush3.bf16.msra.mxu1 %v2719_v4 }
 0x92d   :  { %1306 = vperm.xlu1 %1973, %v1235_v6  }
 0x92e   :  { %1910 = vmatpush3.bf16.xpose.msra.mxu0 %v1257_v13 }
 0x931   :  { %1975 = vset.pattern.permute.xlu1 %v2383_v10 }
 0x932   :  { %1465 = vperm.xlu1 %1975, %v1906_v3  }
 0x935   :  { %1912 = vmatmul.mubr.msk.bf16.vlgmr.msra.gmra.mrb[20].mxu0 %vm1249_vm8, %v1167_v14 }
 0x99e   :  { %v1312_v15 = vpop.permute.xlu1 %1311 }
 0x99f   :  { %v1302_v21 = vpop.permute.xlu0 %1301 }
 0x9a3   :  { %v1454_v16 = vpop.permute.xlu1 %1453 }
 0x9a4   :  { %v1458_v22 = vpop.permute.xlu0 %1457 }
 0x9a8   :  { %v1317_v5 = vpop.permute.xlu1 %1316  ;;  %v1462_v30 = vpop.permute.xlu0 %1461 }
 0x9ac   :  { %v1307_v28 = vpop.permute.xlu1 %1306 }
 0x9b1   :  { %v1466_v51 = vpop.permute.xlu1 %1465 }
 0xa08   :  { %v1293_v23 = vpop.f32.mrb[20].mxu0 }
 0xa09   :  { %v1322_v17 = vrot.slane %v1293_v23, %v2593_v24  ;;  %v1471_v26 = vrot.slane %v1293_v23, %v2595_v25  ;;  %v1913_v18 = vpop.f32.mrb[21].mxu0 }
 0xa0a   :  { %v1296_v19 = vpop.f32.mrb[22].mxu0 }
 0xa0b   :  { %v1914_v31 = vpop.f32.mrb[23].mxu0  ;;  %v1324_v32 = vadd.f32 %v1322_v17, %v1307_v28  ;;  %v1323_v33 = vadd.f32 %v1322_v17, %v1302_v21  ;;  %v1325_v38 = vadd.f32 %v1322_v17, %v1312_v15  ;;  %v1472_v39 = vadd.f32 %v1471_v26, %v1454_v16 }
 0xa0c   :  { %v1474_v40 = vadd.f32 %v1471_v26, %v1462_v30  ;;  %v1473_v11 = vadd.f32 %v1471_v26, %v1458_v22  ;;  %v1326_v24 = vadd.f32 %v1322_v17, %v1317_v5  ;;  %v1475_v57 = vadd.f32 %v1471_v26, %v1466_v51 }
 0xa0d   :  { %vm1328_vm2 = vcmp.gt.f32.partialorder %v1324_v32, 0.0  ;;  %v1332_v25 = vmul.f32 0.2, %v1324_v32  ;;  %vm1327_vm9 = vcmp.gt.f32.partialorder %v1323_v33, 0.0  ;;  %v1331_v41 = vmul.f32 0.2, %v1323_v33 }
 0xa0e   :  { %vm1329_vm10 = vcmp.gt.f32.partialorder %v1325_v38, 0.0  ;;  %v1333_v42 = vmul.f32 0.2, %v1325_v38  ;;  %vm1476_vm11 = vcmp.gt.f32.partialorder %v1472_v39, 0.0  ;;  %v1480_v43 = vmul.f32 0.2, %v1472_v39 }
 0xa0f   :  { %v1336_v44 = vsel %vm1328_vm2, %v1324_v32, %v1332_v25  ;;  %v1335_v45 = vsel %vm1327_vm9, %v1323_v33, %v1331_v41  ;;  %vm1478_vm12 = vcmp.gt.f32.partialorder %v1474_v40, 0.0  ;;  %v1482_v46 = vmul.f32 0.2, %v1474_v40 }
 0xa10   :  { %v1348_v47 = vadd.f32 %v1771_v29, %v1336_v44  ;;  %v1347_v48 = vadd.f32 %v1770_v20, %v1335_v45  ;;  %v1337_v49 = vsel %vm1329_vm10, %v1325_v38, %v1333_v42  ;;  %v1484_v50 = vsel %vm1476_vm11, %v1472_v39, %v1480_v43 }
 0xa11   :  { %v1349_v35 = vadd.f32 %v1774_v9, %v1337_v49  ;;  %vm1477_vm13 = vcmp.gt.f32.partialorder %v1473_v11, 0.0  ;;  %v1488_v36 = vadd.f32 %v1770_v20, %v1484_v50  ;;  %v1481_v54 = vmul.f32 0.2, %v1473_v11 }
 0xa12   :  { %v1354_v52 = vsel %vm168_vm0, %v1348_v47, -inf  ;;  %v1351_v53 = vsel %vm168_vm0, %v1347_v48, -inf  ;;  %v1486_v55 = vsel %vm1478_vm12, %v1474_v40, %v1482_v46  ;;  %v1334_v56 = vmul.f32 0.2, %v1326_v24 }
 0xa13   :  { %1355 = vmax.xlane.f32.xlu1 %v1354_v52  ;;  %1352 = vmax.xlane.f32.xlu0 %v1351_v53  ;;  %v1485_v58 = vsel %vm1477_vm13, %v1473_v11, %v1481_v54  ;;  %vm1330_vm1 = vcmp.gt.f32.partialorder %v1326_v24, 0.0  ;;  %v1357_v34 = vsel %vm168_vm0, %v1349_v35, -inf  ;;  %v1492_v60 = vsel %vm168_vm0, %v1488_v36, -inf }
 0xa14   :  { %v1490_v61 = vadd.f32 %v1774_v9, %v1486_v55  ;;  %v1489_v37 = vadd.f32 %v1771_v29, %v1485_v58  ;;  %v1338_v62 = vsel %vm1330_vm1, %v1326_v24, %v1334_v56  ;;  %v1483_v63 = vmul.f32 0.2, %v1475_v57 }
 0xa15   :  { %vm1479_vm14 = vcmp.gt.f32.partialorder %v1475_v57, 0.0  ;;  %v1350_v0 = vadd.f32 %v1775_v59, %v1338_v62 }
 0xa16   :  { %v1498_v1 = vsel %vm168_vm0, %v1490_v61, -inf  ;;  %v1495_v2 = vsel %vm168_vm0, %v1489_v37, -inf  ;;  %v1487_v3 = vsel %vm1479_vm14, %v1475_v57, %v1483_v63 }
 0xa17   :  { %1358 = vmax.xlane.f32.xlu1 %v1357_v34  ;;  %1493 = vmax.xlane.f32.xlu0 %v1492_v60  ;;  %v1360_v6 = vsel %vm168_vm0, %v1350_v0, -inf  ;;  %v1491_v10 = vadd.f32 %v1775_v59, %v1487_v3 }
 0xa19   :  { %v1501_v12 = vsel %vm168_vm0, %v1491_v10, -inf }
 0xa1b   :  { %1499 = vmax.xlane.f32.xlu1 %v1498_v1  ;;  %1496 = vmax.xlane.f32.xlu0 %v1495_v2 }
 0xa1f   :  { %1361 = vmax.xlane.f32.xlu0 %v1360_v6 }
 0xa23   :  { %1502 = vmax.xlane.f32.xlu0 %v1501_v12 }
 0xa2c   :  { %1536 = vrot.lane.b32.xlu1 %v2721_v8, %s2384_s2 }
 0xa39   :  { %1538 = vrot.lane.b32.xlu0 %v2719_v4, %s2384_s2 }
 0xaa0   :  { %v1356_v13 = vpop.xlane.xlu1 %1355  ;;  %v1353_v14 = vpop.xlane.xlu0 %1352 }
 0xaa1   :  { %v1364_v15 = vsub.f32 %v1348_v47, %v1356_v13  ;;  %v1363_v16 = vsub.f32 %v1347_v48, %v1353_v14 }
 0xaa3   :  { %v1369_v21 = vmul.f32 1.442695, %v1364_v15  ;;  %v1367_v5 = vmul.f32 1.442695, %v1363_v16 }
 0xaa4   :  { %v1359_v22 = vpop.xlane.xlu1 %1358  ;;  %v1494_v7 = vpop.xlane.xlu0 %1493 }
 0xaa5   :  { %2084 = vpow2.f32 %v1369_v21  ;;  %v1365_v23 = vsub.f32 %v1349_v35, %v1359_v22  ;;  %v1504_v17 = vsub.f32 %v1488_v36, %v1494_v7 }
 0xaa6   :  { %2086 = vpow2.f32 %v1367_v5 }
 0xaa7   :  { %v1371_v26 = vmul.f32 1.442695, %v1365_v23  ;;  %v1508_v18 = vmul.f32 1.442695, %v1504_v17 }
 0xaa8   :  { %v1500_v27 = vpop.xlane.xlu1 %1499  ;;  %v1497_v28 = vpop.xlane.xlu0 %1496 }
 0xaa9   :  { %2088 = vpow2.f32 %v1371_v26  ;;  %v1506_v8 = vsub.f32 %v1490_v61, %v1500_v27  ;;  %v1505_v19 = vsub.f32 %v1489_v37, %v1497_v28 }
 0xaaa   :  { %2090 = vpow2.f32 %v1508_v18 }
 0xaab   :  { %v1510_v4 = vmul.f32 1.442695, %v1505_v19  ;;  %v1512_v29 = vmul.f32 1.442695, %v1506_v8 }
 0xaac   :  { %v1537_v20 = vpop.permute.xlu1 %1536  ;;  %v1362_v30 = vpop.xlane.xlu0 %1361 }
 0xaad   :  { %v1366_v31 = vsub.f32 %v1350_v0, %v1362_v30  ;;  %1923 = vmatprep.subr.bf16.mxu0 %v1537_v20  ;;  %2092 = vpow2.f32 %v1510_v4 }
 0xaae   :  { %1924 = vmatpush3.bf16.msra.mxu0 %v1537_v20  ;;  %2094 = vpow2.f32 %v1512_v29 }
 0xaaf   :  { %v2085_v32 = vpop.eup %2084  ;;  %v1373_v33 = vmul.f32 1.442695, %v1366_v31 }
 0xab0   :  { %v2087_v38 = vpop.eup %2086  ;;  %v1503_v39 = vpop.xlane.xlu0 %1502  ;;  %v1378_v9 = vsel %vm168_vm0, %v2085_v32, 0.0 }
 0xab1   :  { %2096 = vpow2.f32 %v1373_v33  ;;  %v1507_v40 = vsub.f32 %v1491_v10, %v1503_v39  ;;  %1379 = vadd.xlane.f32.xlu0 %v1378_v9  ;;  %v1375_v11 = vsel %vm168_vm0, %v2087_v38, 0.0  ;;  %v1391_v24 = vpack.c.bf16 %v2085_v32, %v2087_v38 }
 0xab2   :  { %1376 = vadd.xlane.f32.xlu1 %v1375_v11 }
 0xab3   :  { %v2089_v25 = vpop.eup %2088  ;;  %v1514_v41 = vmul.f32 1.442695, %v1507_v40  ;;  %1919 = vmatprep.mubr.msk.bf16.mxu1 %vm168_vm0, %v1391_v24 }
 0xab4   :  { %v1539_v42 = vpop.permute.xlu0 %1538  ;;  %v1381_v43 = vsel %vm168_vm0, %v2089_v25, 0.0  ;;  %v2091_v44 = vpop.eup %2090 }
 0xab5   :  { %2098 = vpow2.f32 %v1514_v41  ;;  %1925 = vmatprep.subr.bf16.mxu0 %v1539_v42  ;;  %v1516_v46 = vsel %vm168_vm0, %v2091_v44, 0.0 }
 0xab6   :  { %1382 = vadd.xlane.f32.xlu1 %v1381_v43  ;;  %1926 = vmatpush3.bf16.msra.mxu0 %v1539_v42 }
 0xab7   :  { %v2093_v45 = vpop.eup %2092 }
 0xab8   :  { %v1532_v47 = vpack.c.bf16 %v2093_v45, %v2091_v44  ;;  %v2095_v48 = vpop.eup %2094  ;;  %v1519_v53 = vsel %vm168_vm0, %v2093_v45, 0.0 }
 0xab9   :  { %v1522_v51 = vsel %vm168_vm0, %v2095_v48, 0.0 }
 0xaba   :  { %1517 = vadd.xlane.f32.xlu1 %v1516_v46  ;;  %1927 = vmatprep.mubr.msk.bf16.mxu0 %vm168_vm0, %v1532_v47 }
 0xabb   :  { %v2097_v49 = vpop.eup %2096 }
 0xabc   :  { %v1384_v50 = vsel %vm168_vm0, %v2097_v49, 0.0  ;;  %v1392_v35 = vpack.c.bf16 %v2097_v49, %v2089_v25 }
 0xabd   :  { %1385 = vadd.xlane.f32.xlu0 %v1384_v50 }
 0xabe   :  { %1523 = vadd.xlane.f32.xlu1 %v1522_v51  ;;  %1920 = vmatmul.mubr.msk.bf16.vlgmr.msra.gmra.mrb[16].mxu1 %vm168_vm0, %v1392_v35 }
 0xabf   :  { %v2099_v52 = vpop.eup %2098 }
 0xac0   :  { %v1533_v36 = vpack.c.bf16 %v2099_v52, %v2095_v48  ;;  %v1525_v54 = vsel %vm168_vm0, %v2099_v52, 0.0 }
 0xac1   :  { %1520 = vadd.xlane.f32.xlu0 %v1519_v53 }
 0xac2   :  { %1928 = vmatmul.mubr.msk.bf16.vlgmr.msra.gmra.mrb[24].mxu0 %vm168_vm0, %v1533_v36  ;;  %vm1613_vm0 = vcmask 64512  }
 0xac5   :  { %1526 = vadd.xlane.f32.xlu0 %v1525_v54 }
 0xb3e   :  { %v1380_v56 = vpop.xlane.xlu0 %1379 }
 0xb3f   :  { %v1377_v55 = vpop.xlane.xlu1 %1376  ;;  %2100 = vrcp.f32 %v1380_v56 }
 0xb40   :  { %2102 = vrcp.f32 %v1377_v55 }
 0xb43   :  { %v1383_v57 = vpop.xlane.xlu1 %1382 }
 0xb44   :  { %2104 = vrcp.f32 %v1383_v57 }
 0xb47   :  { %v1518_v59 = vpop.xlane.xlu1 %1517 }
 0xb48   :  { %2106 = vrcp.f32 %v1518_v59 }
 0xb49   :  { %v2101_v37 = vpop.eup %2100 }
 0xb4a   :  { %v1386_v58 = vpop.xlane.xlu0 %1385  ;;  %v2103_v63 = vpop.eup %2102 }
 0xb4b   :  { %v1524_v60 = vpop.xlane.xlu1 %1523 }
 0xb4c   :  { %2108 = vrcp.f32 %v1524_v60 }
 0xb4d   :  { %2110 = vrcp.f32 %v1386_v58 }
 0xb4e   :  { %v1521_v34 = vpop.xlane.xlu0 %1520  ;;  %v2105_v2 = vpop.eup %2104 }
 0xb52   :  { %v1527_v61 = vpop.xlane.xlu0 %1526  ;;  %v2107_v3 = vpop.eup %2106 }
 0xb53   :  { %2112 = vrcp.f32 %v1527_v61 }
 0xb54   :  { %2114 = vrcp.f32 %v1521_v34 }
 0xb56   :  { %v2109_v10 = vpop.eup %2108 }
 0xb57   :  { %v2111_v13 = vpop.eup %2110 }
 0xb5d   :  { %v2113_v21 = vpop.eup %2112 }
 0xb5e   :  { %v2115_v23 = vpop.eup %2114 }
 0xb91   :  { %v1921_v62 = vpop.f32.mrb[16].mxu1 }
 0xb92   :  { %v1433_v1 = vpop.f32.mrb[17].mxu1  ;;  %v1450_v14 = vmul.f32 %v2105_v2, %v1921_v62 }
 0xb93   :  { %v1922_v0 = vpop.f32.mrb[18].mxu1  ;;  %v1448_v5 = vmul.f32 %v2103_v63, %v1433_v1 }
 0xb94   :  { %v1436_v6 = vpop.f32.mrb[19].mxu1  ;;  %v1451_v17 = vmul.f32 %v2111_v13, %v1922_v0 }
 0xb95   :  { %v1929_v12 = vpop.f32.mrb[24].mxu0  ;;  %v1449_v28 = vmul.f32 %v2101_v37, %v1436_v6 }
 0xb96   :  { %v1599_v15 = vmul.f32 %v2109_v10, %v1929_v12  ;;  %v1582_v16 = vpop.f32.mrb[25].mxu0 }
 0xb97   :  { %v1597_v22 = vmul.f32 %v2107_v3, %v1582_v16  ;;  %v1930_v7 = vpop.f32.mrb[26].mxu0 }
 0xb98   :  { %v1603_v26 = vadd.f32 %v1599_v15, %v1450_v14  ;;  %v1600_v18 = vmul.f32 %v2113_v21, %v1930_v7  ;;  %v1585_v27 = vpop.f32.mrb[27].mxu0 }
 0xb99   :  { %v1601_v8 = vadd.f32 %v1597_v22, %v1448_v5  ;;  %v1598_v19 = vmul.f32 %v2115_v23, %v1585_v27 }
 0xb9a   :  { %v1604_v4 = vadd.f32 %v1600_v18, %v1451_v17  ;;  %v2762_v29 = vmul.f32 0.5, %v1603_v26 }
 0xb9b   :  { %v2764_v20 = vmul.f32 0.5, %v1601_v8  ;;  %v1602_v30 = vadd.f32 %v1598_v19, %v1449_v28 }
 0xb9c   :  { %v2766_v31 = vmul.f32 0.5, %v1604_v4  ;;  %v1611_v9 = vmul.f32 %v2762_v29, %v2762_v29 }
 0xb9d   :  { %v2768_v32 = vmul.f32 0.5, %v1602_v30  ;;  %v1609_v33 = vmul.f32 %v2764_v20, %v2764_v20 }
 0xb9e   :  { %v1612_v11 = vmul.f32 %v2766_v31, %v2766_v31  ;;  %v1620_v24 = vsel %vm1613_vm0, %v1611_v9, 0.0 }
 0xb9f   :  { %v1614_v38 = vsel %vm1613_vm0, %v1609_v33, 0.0  ;;  %v1610_v39 = vmul.f32 %v2768_v32, %v2768_v32 }
 0xba0   :  { %1615 = vadd.xlane.f32.xlu1 %v1614_v38  ;;  %v1623_v25 = vsel %vm1613_vm0, %v1612_v11, 0.0 }
 0xba1   :  { %v1617_v40 = vsel %vm1613_vm0, %v1610_v39, 0.0 }
 0xba2   :  { %1618 = vadd.xlane.f32.xlu0 %v1617_v40 }
 0xba4   :  { %1621 = vadd.xlane.f32.xlu1 %v1620_v24 }
 0xba6   :  { %1624 = vadd.xlane.f32.xlu0 %v1623_v25 }
 0xba7   :  { %2319 = shalt.err (!%p2316_p12)
}
 0xba8   :  { %s2320_s26 = scalar_lea.hbm %s2828_s8, 512 }
 0xba9   :  { %p2321_p13 = scmp.ne.s32.totalorder %s2828_s8, %s2320_s26  ;;  %p2324_p0 = scmp.lt.u32.totalorder %s2320_s26, %s2828_s8 }
 0xbab   :  { %p2326_p1 = pnand %p2324_p0, %p2321_p13 }
 0xbad   :  { %2329 = shalt.err (!%p2326_p1)
}
 0xbae   :  { %s2386_s29 = smov 128   ;;  %s2387_s0 = smov 8  }
 0xbaf   :  { %1685 = dma.vmem_to_hbm [thread:$0]  %s1680_s19, 512, %s2828_s8, [#allocation4], %s2386_s29, %s2386_s29, %s2387_s0  }
 0xbb0   :  { %s2388_s8 = smov [#allocation17]  }
 0xbb1   :  { %s1691_s18 = sshll.u32 %s2388_s8, 4  ;;  %s1692_s18 = int_to_ptr.vmem [resolvable:$true] %s1691_s18 }
 0xbb2   :  { %s2330_s30 = scalar_lea.vmem %s1692_s18, 512  ;;  %p2335_p3 = scmp.lt.s32.totalorder %s1692_s18, %s1692_s18 }
 0xbb3   :  { %p2331_p2 = scmp.ne.s32.totalorder %s1692_s18, %s2330_s30  ;;  %p2336_p4 = scmp.lt.s32.totalorder %s2330_s30, %s2330_s30 }
 0xbb5   :  { %p2337_p5 = por %p2336_p4, %p2335_p3 }
 0xbb7   :  { %p2338_p6 = pnand %p2337_p5, %p2331_p2 }
 0xc2d   :  { %v1616_v41 = vpop.xlane.xlu1 %1615 }
 0xc2e   :  { %2116 = vrsqrt.f32 %v1616_v41  ;;  %vm1628_vm15 = vcmp.eq.f32.partialorder %v1616_v41, inf  ;;  %v1631_v48 = vand.u32 2147483648, %v1616_v41  ;;  %vm1630_vm3 = vcmp.eq.f32.partialorder %v1616_v41, 0.0 }
 0xc2f   :  { %v1619_v42 = vpop.xlane.xlu0 %1618 }
 0xc30   :  { %2118 = vrsqrt.f32 %v1619_v42  ;;  %vm1635_vm4 = vcmp.eq.f32.partialorder %v1619_v42, inf  ;;  %v1638_v52 = vand.u32 2147483648, %v1619_v42  ;;  %vm1637_vm5 = vcmp.eq.f32.partialorder %v1619_v42, 0.0 }
 0xc31   :  { %v1622_v43 = vpop.xlane.xlu1 %1621 }
 0xc32   :  { %2120 = vrsqrt.f32 %v1622_v43  ;;  %vm1642_vm6 = vcmp.eq.f32.partialorder %v1622_v43, inf  ;;  %vm1644_vm7 = vcmp.eq.f32.partialorder %v1622_v43, 0.0  ;;  %v1645_v57 = vand.u32 2147483648, %v1622_v43 }
 0xc33   :  { %v1625_v44 = vpop.xlane.xlu0 %1624 }
 0xc34   :  { %2122 = vrsqrt.f32 %v1625_v44  ;;  %vm1649_vm8 = vcmp.eq.f32.partialorder %v1625_v44, inf  ;;  %v1652_v61 = vand.u32 2147483648, %v1625_v44  ;;  %vm1651_vm2 = vcmp.eq.f32.partialorder %v1625_v44, 0.0 }
 0xc38   :  { %v2117_v45 = vpop.eup %2116 }
 0xc39   :  { %v1627_v46 = vmul.f32 %v2117_v45, %v1616_v41 }
 0xc3a   :  { %v2119_v47 = vpop.eup %2118 }
 0xc3b   :  { %v1629_v49 = vsel %vm1628_vm15, %v1616_v41, %v1627_v46  ;;  %v1634_v50 = vmul.f32 %v2119_v47, %v1619_v42 }
 0xc3c   :  { %v2121_v35 = vpop.eup %2120  ;;  %v1632_v51 = vsel %vm1630_vm3, %v1631_v48, %v1629_v49 }
 0xc3d   :  { %v1654_v53 = vmax.f32 %v1632_v51, 1e-12  ;;  %v1636_v36 = vsel %vm1635_vm4, %v1619_v42, %v1634_v50  ;;  %v1641_v54 = vmul.f32 %v2121_v35, %v1622_v43 }
 0xc3e   :  { %v2123_v55 = vpop.eup %2122  ;;  %v1639_v56 = vsel %vm1637_vm5, %v1638_v52, %v1636_v36 }
 0xc3f   :  { %2124 = vrcp.f32 %v1654_v53  ;;  %v1655_v58 = vmax.f32 %v1639_v56, 1e-12  ;;  %v1643_v59 = vsel %vm1642_vm6, %v1622_v43, %v1641_v54  ;;  %v1648_v34 = vmul.f32 %v2123_v55, %v1625_v44 }
 0xc40   :  { %v1646_v60 = vsel %vm1644_vm7, %v1645_v57, %v1643_v59 }
 0xc41   :  { %2126 = vrcp.f32 %v1655_v58  ;;  %v1656_v37 = vmax.f32 %v1646_v60, 1e-12  ;;  %v1650_v62 = vsel %vm1649_vm8, %v1625_v44, %v1648_v34 }
 0xc42   :  { %v1653_v63 = vsel %vm1651_vm2, %v1652_v61, %v1650_v62 }
 0xc43   :  { %2128 = vrcp.f32 %v1656_v37  ;;  %v1657_v1 = vmax.f32 %v1653_v63, 1e-12 }
 0xc45   :  { %2130 = vrcp.f32 %v1657_v1 }
 0xc49   :  { %v2125_v2 = vpop.eup %2124 }
 0xc4a   :  { %v1659_v0 = vmul.f32 %v2125_v2, %v2764_v20 }
 0xc4b   :  { %v2127_v3 = vpop.eup %2126 }
 0xc4c   :  { %v1661_v6 = vmul.f32 %v2127_v3, %v2768_v32  ;;  %v1666_v10 = vsel %vm1613_vm0, %v1659_v0, 0.0 }
 0xc4d   :  { %v2129_v12 = vpop.eup %2128  ;;  %1670 = vst [vmem:[#allocation17] sm:$0xff] %v1666_v10 }
 0xc4e   :  { %v1663_v13 = vmul.f32 %v2129_v12, %v2762_v29  ;;  %v1667_v14 = vsel %vm1613_vm0, %v1661_v6, 0.0 }
 0xc4f   :  { %v2131_v15 = vpop.eup %2130  ;;  %1671 = vst [vmem:[#allocation17 + $0x8] sm:$0xff] %v1667_v14 }
 0xc50   :  { %v1665_v16 = vmul.f32 %v2131_v15, %v2766_v31  ;;  %v1668_v21 = vsel %vm1613_vm0, %v1663_v13, 0.0 }
 0xc51   :  { %1672 = vst [vmem:[#allocation17 + $0x10] sm:$0xff] %v1668_v21 }
 0xc52   :  { %v1669_v5 = vsel %vm1613_vm0, %v1665_v16, 0.0 }
 0xc53   :  { %1673 = vst [vmem:[#allocation17 + $0x18] sm:$0xff] %v1669_v5 }
 0xc54   :  { %2341 = shalt.err (!%p2338_p6)
}
 0xc55   :  { %s2342_s1 = scalar_lea.hbm %s2829_s9, 512 }
 0xc56   :  { %p2343_p7 = scmp.ne.s32.totalorder %s2829_s9, %s2342_s1  ;;  %p2346_p8 = scmp.lt.u32.totalorder %s2342_s1, %s2829_s9 }
 0xc58   :  { %p2348_p9 = pnand %p2346_p8, %p2343_p7 }
 0xc5a   :  { %2351 = shalt.err (!%p2348_p9)
}
 0xc5b   :  { %1697 = dma.vmem_to_hbm [thread:$0]  %s1692_s18, 512, %s2829_s9, [#allocation18], %s2386_s29, %s2386_s29, %s2387_s0  }
 0xc5c   :  { %2362 = dma.done.wait [#allocation4], 512  }
 0xc5d   :  { %2363 = vsyncadd [#allocation4], 4294966784 }
 0xc5e   :  { %2364 = dma.done.wait [#allocation18], 512  }
 0xc5f   :  { %2365 = vsyncadd [#allocation18], 4294966784 }
 0xc60   :  { %1704 = vsyncpa [#allocation3], 1 }
 0xc61   :  { %1705 = vsyncpa [#allocation6], 1 }
 0xc62   :  { %1706 = vsyncpa [#allocation9], 1 }
 0xc63   :  { %1707 = vsyncpa [#allocation12], 1 }
 0xc64   :  { %1708 = vsyncpa [#allocation15], 1 }
 0xc65   :  { %1709 = vsyncpa [#allocation4], 1 }
 0xc66   :  { %1710 = vsyncpa [#allocation18], 1 }

</bundles_post_ra>
